<compile_context>
chip_gen: v6e
topology: v6e:2x2x1
jax: 0.10.0
libtpu: 0.0.40
codegen_flags: <defaults>
</compile_context>

<pallas_src>
import functools

import jax
import jax.numpy as jnp
from jax.experimental import pallas as pl
from jax.experimental.pallas import tpu as pltpu


# ----------------------------------------------------------------------------
# Pallas kernel: per-phase fused (w_sub @ patches) + bias, then activation.
# Output block is (Cout, tn) with tn on the lane axis (lane-dense stores).
# ----------------------------------------------------------------------------
def _fused_matmul_kernel(a_ref, w_ref, b_ref, o_ref, *, activation):
    # a_ref: (1, K, tn)  w_ref: (1, Cout, K)  b_ref: (Cout, 1)  o_ref: (1, Cout, tn)
    acc = jnp.dot(w_ref[0], a_ref[0], preferred_element_type=jnp.float32)
    y = acc + b_ref[...]
    if activation == "relu":
        y = jnp.maximum(y, 0.0)
    elif activation == "tanh":
        y = jnp.tanh(y)
    o_ref[0] = y.astype(o_ref.dtype)


def _choose_m_tile(m, cap=2048):
    """Largest tile <= cap that divides m and is a multiple of 128, else full m."""
    if m <= cap:
        return m
    t = (cap // 128) * 128
    while t >= 128:
        if m % t == 0:
            return t
        t -= 128
    return m


def fused_matmul_phases(a, w, bias, activation):
    """a: (P, K, M), w: (P, Cout, K), bias: (Cout, 1) -> (P, Cout, M) float32."""
    P, K, M = a.shape
    Pw, Cout, Kw = w.shape
    assert P == Pw and K == Kw
    tn = _choose_m_tile(M)
    grid = (P, M // tn)

    kernel = functools.partial(_fused_matmul_kernel, activation=activation)
    return pl.pallas_call(
        kernel,
        out_shape=jax.ShapeDtypeStruct((P, Cout, M), jnp.float32),
        grid_spec=pltpu.PrefetchScalarGridSpec(
            num_scalar_prefetch=0,
            grid=grid,
            in_specs=[
                pl.BlockSpec((1, K, tn), lambda p, m: (p, 0, m)),
                pl.BlockSpec((1, Cout, K), lambda p, m: (p, 0, 0)),
                pl.BlockSpec((Cout, 1), lambda p, m: (0, 0)),
            ],
            out_specs=pl.BlockSpec((1, Cout, tn), lambda p, m: (p, 0, m)),
        ),
        compiler_params=pltpu.CompilerParams(
            dimension_semantics=("parallel", "parallel"),
        ),
    )(a.astype(jnp.float32), w.astype(jnp.float32), bias.astype(jnp.float32))


# ----------------------------------------------------------------------------
# ConvTranspose2d (bias=False) + folded eval-mode BatchNorm + activation,
# via sub-pixel phase decomposition + the Pallas fused matmul above.
# ----------------------------------------------------------------------------
def conv_transpose_bn_act(x_cnhw, w_ct, scale, shift, stride, padding, activation):
    """x_cnhw: (Cin, N, H, W) channel-major activations.
    w_ct: (Cin, Cout, k, k) PyTorch ConvTranspose2d weight layout.
    scale/shift: (Cout,) folded BN scale & shift (1 / 0 when no BN).
    Returns (Cout, N, Hout, Wout)."""
    Cin, N, H, W = x_cnhw.shape
    Cout, k = w_ct.shape[1], w_ct.shape[2]
    s, p = stride, padding
    assert k % s == 0
    t = k // s                                  # kernel taps per dim per phase
    Hout = (H - 1) * s - 2 * p + k
    Wout = (W - 1) * s - 2 * p + k

    # Fold BN scale into the conv weight (exact).
    w_scaled = w_ct * scale.reshape(1, Cout, 1, 1)

    # Per-phase geometry along one spatial dim.
    #   output index oy = s*b + phi; contributing kernel rows ky = q + j*s,
    #   contributing input rows iy = b + c - j  (j = 0..t-1).
    def phase_geom(phi, size_in, size_out):
        q = (phi + p) % s
        c = (phi + p - q) // s
        taps = [q + j * s for j in range(t)]
        nblk = -(-(size_out - phi) // s)        # ceil((size_out - phi)/s)
        pad_lo = max(0, (t - 1) - c)
        pad_hi = max(0, (nblk - 1) + c - (size_in - 1))
        starts = [pad_lo + c - j for j in range(t)]
        return taps, nblk, pad_lo, pad_hi, starts

    geo_y = [phase_geom(phi, H, Hout) for phi in range(s)]
    geo_x = [phase_geom(phi, W, Wout) for phi in range(s)]
    By, Bx = geo_y[0][1], geo_x[0][1]
    assert all(g[1] == By for g in geo_y) and all(g[1] == Bx for g in geo_x)

    a_phases, w_phases = [], []
    for phi_y in range(s):
        ky_taps, _, pty, pby, sy = geo_y[phi_y]
        for phi_x in range(s):
            kx_taps, _, ptx, pbx, sx = geo_x[phi_x]
            xp = jnp.pad(x_cnhw, ((0, 0), (0, 0), (pty, pby), (ptx, pbx)))
            # Patches: (Cin, t*t, N, By, Bx) -> (Cin*t*t, N*By*Bx); K order (cin, jy, jx).
            patches = jnp.stack(
                [xp[:, :, sy[jy]:sy[jy] + By, sx[jx]:sx[jx] + Bx]
                 for jy in range(t) for jx in range(t)],
                axis=1,
            ).reshape(Cin * t * t, N * By * Bx)
            a_phases.append(patches)
            # Matching sub-kernel: (Cin, Cout, t, t) -> (Cout, Cin*t*t).
            w_sub = w_scaled[:, :, jnp.array(ky_taps), :][:, :, :, jnp.array(kx_taps)]
            w_sub = jnp.transpose(w_sub, (1, 0, 2, 3)).reshape(Cout, Cin * t * t)
            w_phases.append(w_sub)

    a = jnp.stack(a_phases, axis=0)             # (s*s, Cin*t*t, N*By*Bx)
    wm = jnp.stack(w_phases, axis=0)            # (s*s, Cout, Cin*t*t)
    bias = shift.reshape(Cout, 1)

    # TODO(synk): the phase patch gather above is still materialized in HBM by
    # XLA rather than fused into the kernel's grid (P4/emit_pipeline style).
    out = fused_matmul_phases(a, wm, bias, activation)   # (s*s, Cout, M)

    # Interleave phases back into the full output (channel-major layout).
    y = jnp.zeros((Cout, N, Hout, Wout), jnp.float32)
    pi = 0
    for phi_y in range(s):
        for phi_x in range(s):
            y = y.at[:, :, phi_y::s, phi_x::s].set(out[pi].reshape(Cout, N, By, Bx))
            pi += 1
    return y


# ----------------------------------------------------------------------------
# Generator parameters + forward.
# ----------------------------------------------------------------------------
def init_generator_params(key, nz, ngf, nc):
    """DCGAN-style init: conv weights ~ N(0, 0.02), BN gamma ~ N(1, 0.02), beta=0."""
    chans = [nz, ngf * 8, ngf * 4, ngf * 2, ngf, nc]
    params = []
    for li in range(5):
        key, kw, kg, km, kv = jax.random.split(key, 5)
        cin, cout = chans[li], chans[li + 1]
        layer = {"w": 0.02 * jax.random.normal(kw, (cin, cout, 4, 4), jnp.float32)}
        if li < 4:  # BatchNorm after first 4 conv-transpose layers
            layer["gamma"] = 1.0 + 0.02 * jax.random.normal(kg, (cout,), jnp.float32)
            layer["beta"] = jnp.zeros((cout,), jnp.float32)
            layer["running_mean"] = 0.1 * jax.random.normal(km, (cout,), jnp.float32)
            layer["running_var"] = 1.0 + 0.1 * jax.random.uniform(kv, (cout,), jnp.float32)
        params.append(layer)
    return params


def generator_forward(params, x_nchw):
    """x: (N, nz, 1, 1) NCHW -> (N, nc, 64, 64) NCHW."""
    eps = 1e-5
    strides = [1, 2, 2, 2, 2]
    paddings = [0, 1, 1, 1, 1]
    h = jnp.transpose(x_nchw, (1, 0, 2, 3))      # channel-major (C, N, H, W)
    for li in range(4):
        lp = params[li]
        scale = lp["gamma"] / jnp.sqrt(lp["running_var"] + eps)
        shift = lp["beta"] - lp["running_mean"] * scale
        h = conv_transpose_bn_act(h, lp["w"], scale, shift,
                                  strides[li], paddings[li], "relu")
    lp = params[4]  # final layer: no BN, Tanh
    cout = lp["w"].shape[1]
    h = conv_transpose_bn_act(h, lp["w"],
                              jnp.ones((cout,), jnp.float32),
                              jnp.zeros((cout,), jnp.float32),
                              strides[4], paddings[4], "tanh")
    return jnp.transpose(h, (1, 0, 2, 3))        # back to NCHW


if __name__ == "__main__":
    # Small but structurally faithful sizes.
    batch, nz, ngf, nc = 2, 8, 8, 3

    key = jax.random.PRNGKey(0)
    key, kparams, kin = jax.random.split(key, 3)
    params = init_generator_params(kparams, nz, ngf, nc)

    # Generator input: latent noise, shape (N, nz, 1, 1).
    z = jax.random.normal(kin, (batch, nz, 1, 1), jnp.float32)

    fwd = jax.jit(generator_forward)
    out = fwd(params, z)
    out = jax.block_until_ready(out)

    assert out.shape == (batch, nc, 64, 64), out.shape
    assert bool(jnp.all(jnp.isfinite(out)))
    assert bool(jnp.all(jnp.abs(out) <= 1.0))  # tanh range

    print("KERNEL_OK")
</pallas_src>

<mosaic_0001>
module attributes {stable_mosaic.version = 11 : i64} {
  func.func @_fused_matmul_kernel(%arg0: i32, %arg1: i32, %arg2: memref<1x128x32xf32, #tpu.memory_space<vmem>>, %arg3: memref<1x64x128xf32, #tpu.memory_space<vmem>>, %arg4: memref<64x1xf32, #tpu.memory_space<vmem>>, %arg5: memref<1x64x32xf32, #tpu.memory_space<vmem>>) attributes {dimension_semantics = [#tpu.dimension_semantics<parallel>, #tpu.dimension_semantics<parallel>], iteration_bounds = array<i64: 1, 1>, scalar_prefetch = 0 : i64, scratch_operands = 0 : i64, tpu.core_type = #tpu.core_type<tc>, window_params = [{transform_indices = @transform_0, window_bounds = array<i64: 1, 128, 32>}, {transform_indices = @transform_1, window_bounds = array<i64: 1, 64, 128>}, {pipeline_mode = #tpu.pipeline_mode<synchronous>, transform_indices = @transform_2, window_bounds = array<i64: 64, 1>}, {transform_indices = @transform_3, window_bounds = array<i64: 1, 64, 32>}]} {
    %c0 = arith.constant 0 : index
    %c0_0 = arith.constant 0 : index
    %c0_1 = arith.constant 0 : index
    %0 = vector.load %arg3[%c0, %c0_0, %c0_1] : memref<1x64x128xf32, #tpu.memory_space<vmem>>, vector<1x64x128xf32>
    %1 = vector.shape_cast %0 : vector<1x64x128xf32> to vector<64x128xf32>
    %c0_2 = arith.constant 0 : index
    %c0_3 = arith.constant 0 : index
    %c0_4 = arith.constant 0 : index
    %2 = vector.load %arg2[%c0_2, %c0_3, %c0_4] : memref<1x128x32xf32, #tpu.memory_space<vmem>>, vector<1x128x32xf32>
    %3 = vector.shape_cast %2 : vector<1x128x32xf32> to vector<128x32xf32>
    %cst = arith.constant dense<0.000000e+00> : vector<64x32xf32>
    %4 = tpu.matmul %1, %3, %cst {dimension_numbers = #tpu.dot_dimension_numbers<[1], [0], [0], [1], [0, 0, 1, 1], [], []>} : vector<64x128xf32>, vector<128x32xf32>, vector<64x32xf32> -> vector<64x32xf32>
    %c0_5 = arith.constant 0 : index
    %c0_6 = arith.constant 0 : index
    %5 = vector.load %arg4[%c0_5, %c0_6] : memref<64x1xf32, #tpu.memory_space<vmem>>, vector<64x1xf32>
    %6 = vector.broadcast %5 : vector<64x1xf32> to vector<64x32xf32>
    %7 = arith.addf %4, %6 : vector<64x32xf32>
    %cst_7 = arith.constant 0.000000e+00 : f32
    %8 = vector.broadcast %cst_7 : f32 to vector<64x32xf32>
    %9 = arith.maximumf %7, %8 : vector<64x32xf32>
    %c0_8 = arith.constant 0 : index
    %c0_9 = arith.constant 0 : index
    %c0_10 = arith.constant 0 : index
    %10 = vector.load %arg5[%c0_8, %c0_9, %c0_10] : memref<1x64x32xf32, #tpu.memory_space<vmem>>, vector<1x64x32xf32>
    %11 = vector.shape_cast %10 : vector<1x64x32xf32> to vector<64x32xf32>
    %12 = vector.shape_cast %9 : vector<64x32xf32> to vector<1x64x32xf32>
    tpu.vector_store %arg5[%c0_8, %c0_9, %c0_10], %12 {strides = array<i32>} : memref<1x64x32xf32, #tpu.memory_space<vmem>>, vector<1x64x32xf32>,
    return
  }
  func.func @transform_0(%arg0: i32, %arg1: i32) -> (i32, i32, i32) {
    %c0_i32 = arith.constant 0 : i32
    %c0_i32_0 = arith.constant 0 : i32
    return %arg0, %c0_i32, %arg1 : i32, i32, i32
  }
  func.func @transform_1(%arg0: i32, %arg1: i32) -> (i32, i32, i32) {
    %c0_i32 = arith.constant 0 : i32
    %c0_i32_0 = arith.constant 0 : i32
    %c0_i32_1 = arith.constant 0 : i32
    return %arg0, %c0_i32, %c0_i32_0 : i32, i32, i32
  }
  func.func @transform_2(%arg0: i32, %arg1: i32) -> (i32, i32) {
    %c0_i32 = arith.constant 0 : i32
    %c0_i32_0 = arith.constant 0 : i32
    %c0_i32_1 = arith.constant 0 : i32
    return %c0_i32, %c0_i32_0 : i32, i32
  }
  func.func @transform_3(%arg0: i32, %arg1: i32) -> (i32, i32, i32) {
    %c0_i32 = arith.constant 0 : i32
    %c0_i32_0 = arith.constant 0 : i32
    return %arg0, %c0_i32, %arg1 : i32, i32, i32
  }
}

module attributes {stable_mosaic.version = 11 : i64} {
  func.func @_fused_matmul_kernel(%arg0: i32, %arg1: i32, %arg2: memref<1x256x32xf32, #tpu.memory_space<vmem>>, %arg3: memref<1x32x256xf32, #tpu.memory_space<vmem>>, %arg4: memref<32x1xf32, #tpu.memory_space<vmem>>, %arg5: memref<1x32x32xf32, #tpu.memory_space<vmem>>) attributes {dimension_semantics = [#tpu.dimension_semantics<parallel>, #tpu.dimension_semantics<parallel>], iteration_bounds = array<i64: 4, 1>, scalar_prefetch = 0 : i64, scratch_operands = 0 : i64, tpu.core_type = #tpu.core_type<tc>, window_params = [{transform_indices = @transform_0, window_bounds = array<i64: 1, 256, 32>}, {transform_indices = @transform_1, window_bounds = array<i64: 1, 32, 256>}, {pipeline_mode = #tpu.pipeline_mode<synchronous>, transform_indices = @transform_2, window_bounds = array<i64: 32, 1>}, {transform_indices = @transform_3, window_bounds = array<i64: 1, 32, 32>}]} {
    %c0 = arith.constant 0 : index
    %c0_0 = arith.constant 0 : index
    %c0_1 = arith.constant 0 : index
    %0 = vector.load %arg3[%c0, %c0_0, %c0_1] : memref<1x32x256xf32, #tpu.memory_space<vmem>>, vector<1x32x256xf32>
    %1 = vector.shape_cast %0 : vector<1x32x256xf32> to vector<32x256xf32>
    %c0_2 = arith.constant 0 : index
    %c0_3 = arith.constant 0 : index
    %c0_4 = arith.constant 0 : index
    %2 = vector.load %arg2[%c0_2, %c0_3, %c0_4] : memref<1x256x32xf32, #tpu.memory_space<vmem>>, vector<1x256x32xf32>
    %3 = vector.shape_cast %2 : vector<1x256x32xf32> to vector<256x32xf32>
    %cst = arith.constant dense<0.000000e+00> : vector<32x32xf32>
    %4 = tpu.matmul %1, %3, %cst {dimension_numbers = #tpu.dot_dimension_numbers<[1], [0], [0], [1], [0, 0, 1, 1], [], []>} : vector<32x256xf32>, vector<256x32xf32>, vector<32x32xf32> -> vector<32x32xf32>
    %c0_5 = arith.constant 0 : index
    %c0_6 = arith.constant 0 : index
    %5 = vector.load %arg4[%c0_5, %c0_6] : memref<32x1xf32, #tpu.memory_space<vmem>>, vector<32x1xf32>
    %6 = vector.broadcast %5 : vector<32x1xf32> to vector<32x32xf32>
    %7 = arith.addf %4, %6 : vector<32x32xf32>
    %cst_7 = arith.constant 0.000000e+00 : f32
    %8 = vector.broadcast %cst_7 : f32 to vector<32x32xf32>
    %9 = arith.maximumf %7, %8 : vector<32x32xf32>
    %c0_8 = arith.constant 0 : index
    %c0_9 = arith.constant 0 : index
    %c0_10 = arith.constant 0 : index
    %10 = vector.load %arg5[%c0_8, %c0_9, %c0_10] : memref<1x32x32xf32, #tpu.memory_space<vmem>>, vector<1x32x32xf32>
    %11 = vector.shape_cast %10 : vector<1x32x32xf32> to vector<32x32xf32>
    %12 = vector.shape_cast %9 : vector<32x32xf32> to vector<1x32x32xf32>
    tpu.vector_store %arg5[%c0_8, %c0_9, %c0_10], %12 {strides = array<i32>} : memref<1x32x32xf32, #tpu.memory_space<vmem>>, vector<1x32x32xf32>,
    return
  }
  func.func @transform_0(%arg0: i32, %arg1: i32) -> (i32, i32, i32) {
    %c0_i32 = arith.constant 0 : i32
    %c0_i32_0 = arith.constant 0 : i32
    return %arg0, %c0_i32, %arg1 : i32, i32, i32
  }
  func.func @transform_1(%arg0: i32, %arg1: i32) -> (i32, i32, i32) {
    %c0_i32 = arith.constant 0 : i32
    %c0_i32_0 = arith.constant 0 : i32
    %c0_i32_1 = arith.constant 0 : i32
    return %arg0, %c0_i32, %c0_i32_0 : i32, i32, i32
  }
  func.func @transform_2(%arg0: i32, %arg1: i32) -> (i32, i32) {
    %c0_i32 = arith.constant 0 : i32
    %c0_i32_0 = arith.constant 0 : i32
    %c0_i32_1 = arith.constant 0 : i32
    return %c0_i32, %c0_i32_0 : i32, i32
  }
  func.func @transform_3(%arg0: i32, %arg1: i32) -> (i32, i32, i32) {
    %c0_i32 = arith.constant 0 : i32
    %c0_i32_0 = arith.constant 0 : i32
    return %arg0, %c0_i32, %arg1 : i32, i32, i32
  }
}

module attributes {stable_mosaic.version = 11 : i64} {
  func.func @_fused_matmul_kernel(%arg0: i32, %arg1: i32, %arg2: memref<1x128x128xf32, #tpu.memory_space<vmem>>, %arg3: memref<1x16x128xf32, #tpu.memory_space<vmem>>, %arg4: memref<16x1xf32, #tpu.memory_space<vmem>>, %arg5: memref<1x16x128xf32, #tpu.memory_space<vmem>>) attributes {dimension_semantics = [#tpu.dimension_semantics<parallel>, #tpu.dimension_semantics<parallel>], iteration_bounds = array<i64: 4, 1>, scalar_prefetch = 0 : i64, scratch_operands = 0 : i64, tpu.core_type = #tpu.core_type<tc>, window_params = [{transform_indices = @transform_0, window_bounds = array<i64: 1, 128, 128>}, {transform_indices = @transform_1, window_bounds = array<i64: 1, 16, 128>}, {pipeline_mode = #tpu.pipeline_mode<synchronous>, transform_indices = @transform_2, window_bounds = array<i64: 16, 1>}, {transform_indices = @transform_3, window_bounds = array<i64: 1, 16, 128>}]} {
    %c0 = arith.constant 0 : index
    %c0_0 = arith.constant 0 : index
    %c0_1 = arith.constant 0 : index
    %0 = vector.load %arg3[%c0, %c0_0, %c0_1] : memref<1x16x128xf32, #tpu.memory_space<vmem>>, vector<1x16x128xf32>
    %1 = vector.shape_cast %0 : vector<1x16x128xf32> to vector<16x128xf32>
    %c0_2 = arith.constant 0 : index
    %c0_3 = arith.constant 0 : index
    %c0_4 = arith.constant 0 : index
    %2 = vector.load %arg2[%c0_2, %c0_3, %c0_4] : memref<1x128x128xf32, #tpu.memory_space<vmem>>, vector<1x128x128xf32>
    %3 = vector.shape_cast %2 : vector<1x128x128xf32> to vector<128x128xf32>
    %cst = arith.constant dense<0.000000e+00> : vector<16x128xf32>
    %4 = tpu.matmul %1, %3, %cst {dimension_numbers = #tpu.dot_dimension_numbers<[1], [0], [0], [1], [0, 0, 1, 1], [], []>} : vector<16x128xf32>, vector<128x128xf32>, vector<16x128xf32> -> vector<16x128xf32>
    %c0_5 = arith.constant 0 : index
    %c0_6 = arith.constant 0 : index
    %5 = vector.load %arg4[%c0_5, %c0_6] : memref<16x1xf32, #tpu.memory_space<vmem>>, vector<16x1xf32>
    %6 = vector.broadcast %5 : vector<16x1xf32> to vector<16x128xf32>
    %7 = arith.addf %4, %6 : vector<16x128xf32>
    %cst_7 = arith.constant 0.000000e+00 : f32
    %8 = vector.broadcast %cst_7 : f32 to vector<16x128xf32>
    %9 = arith.maximumf %7, %8 : vector<16x128xf32>
    %c0_8 = arith.constant 0 : index
    %c0_9 = arith.constant 0 : index
    %c0_10 = arith.constant 0 : index
    %10 = vector.load %arg5[%c0_8, %c0_9, %c0_10] : memref<1x16x128xf32, #tpu.memory_space<vmem>>, vector<1x16x128xf32>
    %11 = vector.shape_cast %10 : vector<1x16x128xf32> to vector<16x128xf32>
    %12 = vector.shape_cast %9 : vector<16x128xf32> to vector<1x16x128xf32>
    tpu.vector_store %arg5[%c0_8, %c0_9, %c0_10], %12 {strides = array<i32>} : memref<1x16x128xf32, #tpu.memory_space<vmem>>, vector<1x16x128xf32>,
    return
  }
  func.func @transform_0(%arg0: i32, %arg1: i32) -> (i32, i32, i32) {
    %c0_i32 = arith.constant 0 : i32
    %c0_i32_0 = arith.constant 0 : i32
    return %arg0, %c0_i32, %arg1 : i32, i32, i32
  }
  func.func @transform_1(%arg0: i32, %arg1: i32) -> (i32, i32, i32) {
    %c0_i32 = arith.constant 0 : i32
    %c0_i32_0 = arith.constant 0 : i32
    %c0_i32_1 = arith.constant 0 : i32
    return %arg0, %c0_i32, %c0_i32_0 : i32, i32, i32
  }
  func.func @transform_2(%arg0: i32, %arg1: i32) -> (i32, i32) {
    %c0_i32 = arith.constant 0 : i32
    %c0_i32_0 = arith.constant 0 : i32
    %c0_i32_1 = arith.constant 0 : i32
    return %c0_i32, %c0_i32_0 : i32, i32
  }
  func.func @transform_3(%arg0: i32, %arg1: i32) -> (i32, i32, i32) {
    %c0_i32 = arith.constant 0 : i32
    %c0_i32_0 = arith.constant 0 : i32
    return %arg0, %c0_i32, %arg1 : i32, i32, i32
  }
}

module attributes {stable_mosaic.version = 11 : i64} {
  func.func @_fused_matmul_kernel(%arg0: i32, %arg1: i32, %arg2: memref<1x64x512xf32, #tpu.memory_space<vmem>>, %arg3: memref<1x8x64xf32, #tpu.memory_space<vmem>>, %arg4: memref<8x1xf32, #tpu.memory_space<vmem>>, %arg5: memref<1x8x512xf32, #tpu.memory_space<vmem>>) attributes {dimension_semantics = [#tpu.dimension_semantics<parallel>, #tpu.dimension_semantics<parallel>], iteration_bounds = array<i64: 4, 1>, scalar_prefetch = 0 : i64, scratch_operands = 0 : i64, tpu.core_type = #tpu.core_type<tc>, window_params = [{transform_indices = @transform_0, window_bounds = array<i64: 1, 64, 512>}, {transform_indices = @transform_1, window_bounds = array<i64: 1, 8, 64>}, {pipeline_mode = #tpu.pipeline_mode<synchronous>, transform_indices = @transform_2, window_bounds = array<i64: 8, 1>}, {transform_indices = @transform_3, window_bounds = array<i64: 1, 8, 512>}]} {
    %c0 = arith.constant 0 : index
    %c0_0 = arith.constant 0 : index
    %c0_1 = arith.constant 0 : index
    %0 = vector.load %arg3[%c0, %c0_0, %c0_1] : memref<1x8x64xf32, #tpu.memory_space<vmem>>, vector<1x8x64xf32>
    %1 = vector.shape_cast %0 : vector<1x8x64xf32> to vector<8x64xf32>
    %c0_2 = arith.constant 0 : index
    %c0_3 = arith.constant 0 : index
    %c0_4 = arith.constant 0 : index
    %2 = vector.load %arg2[%c0_2, %c0_3, %c0_4] : memref<1x64x512xf32, #tpu.memory_space<vmem>>, vector<1x64x512xf32>
    %3 = vector.shape_cast %2 : vector<1x64x512xf32> to vector<64x512xf32>
    %cst = arith.constant dense<0.000000e+00> : vector<8x512xf32>
    %4 = tpu.matmul %1, %3, %cst {dimension_numbers = #tpu.dot_dimension_numbers<[1], [0], [0], [1], [0, 0, 1, 1], [], []>} : vector<8x64xf32>, vector<64x512xf32>, vector<8x512xf32> -> vector<8x512xf32>
    %c0_5 = arith.constant 0 : index
    %c0_6 = arith.constant 0 : index
    %5 = vector.load %arg4[%c0_5, %c0_6] : memref<8x1xf32, #tpu.memory_space<vmem>>, vector<8x1xf32>
    %6 = vector.broadcast %5 : vector<8x1xf32> to vector<8x512xf32>
    %7 = arith.addf %4, %6 : vector<8x512xf32>
    %cst_7 = arith.constant 0.000000e+00 : f32
    %8 = vector.broadcast %cst_7 : f32 to vector<8x512xf32>
    %9 = arith.maximumf %7, %8 : vector<8x512xf32>
    %c0_8 = arith.constant 0 : index
    %c0_9 = arith.constant 0 : index
    %c0_10 = arith.constant 0 : index
    %10 = vector.load %arg5[%c0_8, %c0_9, %c0_10] : memref<1x8x512xf32, #tpu.memory_space<vmem>>, vector<1x8x512xf32>
    %11 = vector.shape_cast %10 : vector<1x8x512xf32> to vector<8x512xf32>
    %12 = vector.shape_cast %9 : vector<8x512xf32> to vector<1x8x512xf32>
    tpu.vector_store %arg5[%c0_8, %c0_9, %c0_10], %12 {strides = array<i32>} : memref<1x8x512xf32, #tpu.memory_space<vmem>>, vector<1x8x512xf32>,
    return
  }
  func.func @transform_0(%arg0: i32, %arg1: i32) -> (i32, i32, i32) {
    %c0_i32 = arith.constant 0 : i32
    %c0_i32_0 = arith.constant 0 : i32
    return %arg0, %c0_i32, %arg1 : i32, i32, i32
  }
  func.func @transform_1(%arg0: i32, %arg1: i32) -> (i32, i32, i32) {
    %c0_i32 = arith.constant 0 : i32
    %c0_i32_0 = arith.constant 0 : i32
    %c0_i32_1 = arith.constant 0 : i32
    return %arg0, %c0_i32, %c0_i32_0 : i32, i32, i32
  }
  func.func @transform_2(%arg0: i32, %arg1: i32) -> (i32, i32) {
    %c0_i32 = arith.constant 0 : i32
    %c0_i32_0 = arith.constant 0 : i32
    %c0_i32_1 = arith.constant 0 : i32
    return %c0_i32, %c0_i32_0 : i32, i32
  }
  func.func @transform_3(%arg0: i32, %arg1: i32) -> (i32, i32, i32) {
    %c0_i32 = arith.constant 0 : i32
    %c0_i32_0 = arith.constant 0 : i32
    return %arg0, %c0_i32, %arg1 : i32, i32, i32
  }
}

module attributes {stable_mosaic.version = 11 : i64} {
  func.func @_fused_matmul_kernel(%arg0: i32, %arg1: i32, %arg2: memref<1x32x2048xf32, #tpu.memory_space<vmem>>, %arg3: memref<1x3x32xf32, #tpu.memory_space<vmem>>, %arg4: memref<3x1xf32, #tpu.memory_space<vmem>>, %arg5: memref<1x3x2048xf32, #tpu.memory_space<vmem>>) attributes {dimension_semantics = [#tpu.dimension_semantics<parallel>, #tpu.dimension_semantics<parallel>], iteration_bounds = array<i64: 4, 1>, scalar_prefetch = 0 : i64, scratch_operands = 0 : i64, tpu.core_type = #tpu.core_type<tc>, window_params = [{transform_indices = @transform_0, window_bounds = array<i64: 1, 32, 2048>}, {transform_indices = @transform_1, window_bounds = array<i64: 1, 3, 32>}, {pipeline_mode = #tpu.pipeline_mode<synchronous>, transform_indices = @transform_2, window_bounds = array<i64: 3, 1>}, {transform_indices = @transform_3, window_bounds = array<i64: 1, 3, 2048>}]} {
    %c0 = arith.constant 0 : index
    %c0_0 = arith.constant 0 : index
    %c0_1 = arith.constant 0 : index
    %0 = vector.load %arg3[%c0, %c0_0, %c0_1] : memref<1x3x32xf32, #tpu.memory_space<vmem>>, vector<1x3x32xf32>
    %1 = vector.shape_cast %0 : vector<1x3x32xf32> to vector<3x32xf32>
    %c0_2 = arith.constant 0 : index
    %c0_3 = arith.constant 0 : index
    %c0_4 = arith.constant 0 : index
    %2 = vector.load %arg2[%c0_2, %c0_3, %c0_4] : memref<1x32x2048xf32, #tpu.memory_space<vmem>>, vector<1x32x2048xf32>
    %3 = vector.shape_cast %2 : vector<1x32x2048xf32> to vector<32x2048xf32>
    %cst = arith.constant dense<0.000000e+00> : vector<3x2048xf32>
    %4 = tpu.matmul %1, %3, %cst {dimension_numbers = #tpu.dot_dimension_numbers<[1], [0], [0], [1], [0, 0, 1, 1], [], []>} : vector<3x32xf32>, vector<32x2048xf32>, vector<3x2048xf32> -> vector<3x2048xf32>
    %c0_5 = arith.constant 0 : index
    %c0_6 = arith.constant 0 : index
    %5 = vector.load %arg4[%c0_5, %c0_6] : memref<3x1xf32, #tpu.memory_space<vmem>>, vector<3x1xf32>
    %6 = vector.broadcast %5 : vector<3x1xf32> to vector<3x2048xf32>
    %7 = arith.addf %4, %6 : vector<3x2048xf32>
    %8 = math.tanh %7 : vector<3x2048xf32>
    %c0_7 = arith.constant 0 : index
    %c0_8 = arith.constant 0 : index
    %c0_9 = arith.constant 0 : index
    %9 = vector.load %arg5[%c0_7, %c0_8, %c0_9] : memref<1x3x2048xf32, #tpu.memory_space<vmem>>, vector<1x3x2048xf32>
    %10 = vector.shape_cast %9 : vector<1x3x2048xf32> to vector<3x2048xf32>
    %11 = vector.shape_cast %8 : vector<3x2048xf32> to vector<1x3x2048xf32>
    tpu.vector_store %arg5[%c0_7, %c0_8, %c0_9], %11 {strides = array<i32>} : memref<1x3x2048xf32, #tpu.memory_space<vmem>>, vector<1x3x2048xf32>,
    return
  }
  func.func @transform_0(%arg0: i32, %arg1: i32) -> (i32, i32, i32) {
    %c0_i32 = arith.constant 0 : i32
    %c0_i32_0 = arith.constant 0 : i32
    return %arg0, %c0_i32, %arg1 : i32, i32, i32
  }
  func.func @transform_1(%arg0: i32, %arg1: i32) -> (i32, i32, i32) {
    %c0_i32 = arith.constant 0 : i32
    %c0_i32_0 = arith.constant 0 : i32
    %c0_i32_1 = arith.constant 0 : i32
    return %arg0, %c0_i32, %c0_i32_0 : i32, i32, i32
  }
  func.func @transform_2(%arg0: i32, %arg1: i32) -> (i32, i32) {
    %c0_i32 = arith.constant 0 : i32
    %c0_i32_0 = arith.constant 0 : i32
    %c0_i32_1 = arith.constant 0 : i32
    return %c0_i32, %c0_i32_0 : i32, i32
  }
  func.func @transform_3(%arg0: i32, %arg1: i32) -> (i32, i32, i32) {
    %c0_i32 = arith.constant 0 : i32
    %c0_i32_0 = arith.constant 0 : i32
    return %arg0, %c0_i32, %arg1 : i32, i32, i32
  }
}

</mosaic_0001>

<bundles_post_ra>
// kernel: generator_forward.5
= control target key start
LH: loop header
LB: loop body
LE: loop exit
PB: predicated region body
PF: predicated region fallthrough
CT: control target
= control target key end

     0   :  { %v315_v2 = vmov 0   ;;  %vm199_vm0 = vcmask 261120   ;;  %s464_s0 = inlined_call_operand.vmem [shape: f32[1,128,32], index: 0, kind: input, shape index: {}]   ;;  %s465_s1 = inlined_call_operand.vmem [shape: f32[1,64,128], index: 1, kind: input, shape index: {}]   ;;  %s466_s2 = inlined_call_operand.vmem [shape: f32[64,1], index: 2, kind: input, shape index: {}]   ;;  %s467_s3 = inlined_call_operand.vmem [shape: f32[1,64,32], index: 3, kind: output, shape index: {}]  }
   0x1   :  { %v37_v0 = vld [vmem:[%s464_s0 + $0x78] sm:$0xff]  ;;  %v36_v1 = vld [vmem:[%s464_s0 + $0x70] sm:$0xff]  ;;  %314 = vset.pattern.permute.xlu1 %v315_v2  ;;  %313 = vset.pattern.permute.xlu0 %v315_v2  ;;  %v35_v3 = vld [vmem:[%s464_s0 + $0x68] sm:$0xff] }
   0x2   :  { %236 = vmatprep.subr.mxu0 %v37_v0  ;;  %280 = vmatprep.subr.mxu1 %v37_v0  ;;  %v34_v4 = vld [vmem:[%s464_s0 + $0x60] sm:$0xff]  ;;  %v33_v5 = vld [vmem:[%s464_s0 + $0x58] sm:$0xff]  ;;  %v32_v6 = vld [vmem:[%s464_s0 + $0x50] sm:$0xff] }
   0x3   :  { %237 = vmatpush3.msra.mxu0 %v37_v0  ;;  %296 = vmatpush3.msra.mxu1 %v37_v0  ;;  %v31_v7 = vld [vmem:[%s464_s0 + $0x48] sm:$0xff]  ;;  %v30_v8 = vld [vmem:[%s464_s0 + $0x40] sm:$0xff]  ;;  %v29_v9 = vld [vmem:[%s464_s0 + $0x38] sm:$0xff] }
   0x4   :  { %238 = vmatprep.subr.mxu0 %v36_v1  ;;  %281 = vmatprep.subr.mxu1 %v36_v1  ;;  %v28_v10 = vld [vmem:[%s464_s0 + $0x30] sm:$0xff]  ;;  %v27_v11 = vld [vmem:[%s464_s0 + $0x28] sm:$0xff]  ;;  %v26_v12 = vld [vmem:[%s464_s0 + $0x20] sm:$0xff] }
   0x5   :  { %239 = vmatpush3.msra.mxu0 %v36_v1  ;;  %297 = vmatpush3.msra.mxu1 %v36_v1  ;;  %v25_v13 = vld [vmem:[%s464_s0 + $0x18] sm:$0xff]  ;;  %v24_v14 = vld [vmem:[%s464_s0 + $0x10] sm:$0xff]  ;;  %v23_v15 = vld [vmem:[%s464_s0 + $0x8] sm:$0xff] }
   0x6   :  { %240 = vmatprep.subr.mxu0 %v35_v3  ;;  %282 = vmatprep.subr.mxu1 %v35_v3  ;;  %v22_v16 = vld [vmem:[%s464_s0] sm:$0xff]  ;;  %v15_v19 = vld [vmem:[%s465_s1 + $0x8] sm:$0xff]  ;;  %v16_v21 = vld [vmem:[%s465_s1 + $0x10] sm:$0xff] }
   0x7   :  { %241 = vmatpush3.msra.mxu0 %v35_v3  ;;  %298 = vmatpush3.msra.mxu1 %v35_v3  ;;  %v14_v17 = vld [vmem:[%s465_s1] sm:$0xff]  ;;  %v19_v20 = vld [vmem:[%s465_s1 + $0x28] sm:$0xff]  ;;  %v20_v22 = vld [vmem:[%s465_s1 + $0x30] sm:$0xff] }
   0x8   :  { %242 = vmatprep.subr.mxu0 %v34_v4  ;;  %283 = vmatprep.subr.mxu1 %v34_v4  ;;  %v18_v18 = vld [vmem:[%s465_s1 + $0x20] sm:$0xff]  ;;  %v40_v23 = vld [vmem:[%s466_s2 + $0x10] sm:$0xff]  ;;  %v17_v25 = vld [vmem:[%s465_s1 + $0x18] sm:$0xff] }
   0x9   :  { %243 = vmatpush3.msra.mxu0 %v34_v4  ;;  %299 = vmatpush3.msra.mxu1 %v34_v4  ;;  %v38_v24 = vld [vmem:[%s466_s2] sm:$0xff]  ;;  %v21_v26 = vld [vmem:[%s465_s1 + $0x38] sm:$0xff]  ;;  %v39_v28 = vld [vmem:[%s466_s2 + $0x8] sm:$0xff] }
   0xa   :  { %244 = vmatprep.subr.mxu0 %v33_v5  ;;  %284 = vmatprep.subr.mxu1 %v33_v5  ;;  %v41_v27 = vld [vmem:[%s466_s2 + $0x18] sm:$0xff]  ;;  %v43_v29 = vld [vmem:[%s466_s2 + $0x28] sm:$0xff]  ;;  %v42_v30 = vld [vmem:[%s466_s2 + $0x20] sm:$0xff] }
   0xb   :  { %245 = vmatpush3.msra.mxu0 %v33_v5  ;;  %300 = vmatpush3.msra.mxu1 %v33_v5  ;;  %v45_v31 = vld [vmem:[%s466_s2 + $0x38] sm:$0xff]  ;;  %v44_v32 = vld [vmem:[%s466_s2 + $0x30] sm:$0xff] }
   0xc   :  { %246 = vmatprep.subr.mxu0 %v32_v6  ;;  %285 = vmatprep.subr.mxu1 %v32_v6 }
   0xd   :  { %247 = vmatpush3.msra.mxu0 %v32_v6  ;;  %301 = vmatpush3.msra.mxu1 %v32_v6 }
   0xe   :  { %248 = vmatprep.subr.mxu0 %v31_v7  ;;  %286 = vmatprep.subr.mxu1 %v31_v7 }
   0xf   :  { %249 = vmatpush3.msra.mxu0 %v31_v7  ;;  %302 = vmatpush3.msra.mxu1 %v31_v7 }
  0x10   :  { %250 = vmatprep.subr.mxu0 %v30_v8  ;;  %287 = vmatprep.subr.mxu1 %v30_v8 }
  0x11   :  { %251 = vmatpush3.msra.mxu0 %v30_v8  ;;  %303 = vmatpush3.msra.mxu1 %v30_v8 }
  0x12   :  { %252 = vmatprep.subr.mxu0 %v29_v9  ;;  %288 = vmatprep.subr.mxu1 %v29_v9 }
  0x13   :  { %253 = vmatpush3.msra.mxu0 %v29_v9  ;;  %304 = vmatpush3.msra.mxu1 %v29_v9 }
  0x14   :  { %254 = vmatprep.subr.mxu0 %v28_v10  ;;  %289 = vmatprep.subr.mxu1 %v28_v10 }
  0x15   :  { %255 = vmatpush3.msra.mxu0 %v28_v10  ;;  %305 = vmatpush3.msra.mxu1 %v28_v10 }
  0x16   :  { %256 = vmatprep.subr.mxu0 %v27_v11  ;;  %290 = vmatprep.subr.mxu1 %v27_v11 }
  0x17   :  { %257 = vmatpush3.msra.mxu0 %v27_v11  ;;  %306 = vmatpush3.msra.mxu1 %v27_v11 }
  0x18   :  { %258 = vmatprep.subr.mxu0 %v26_v12  ;;  %291 = vmatprep.subr.mxu1 %v26_v12 }
  0x19   :  { %259 = vmatpush3.msra.mxu0 %v26_v12  ;;  %307 = vmatpush3.msra.mxu1 %v26_v12 }
  0x1a   :  { %260 = vmatprep.subr.mxu0 %v25_v13  ;;  %292 = vmatprep.subr.mxu1 %v25_v13 }
  0x1b   :  { %261 = vmatpush3.msra.mxu0 %v25_v13  ;;  %308 = vmatpush3.msra.mxu1 %v25_v13 }
  0x1c   :  { %262 = vmatprep.subr.mxu0 %v24_v14  ;;  %293 = vmatprep.subr.mxu1 %v24_v14 }
  0x1d   :  { %263 = vmatpush3.msra.mxu0 %v24_v14  ;;  %309 = vmatpush3.msra.mxu1 %v24_v14 }
  0x1e   :  { %264 = vmatprep.subr.mxu0 %v23_v15  ;;  %294 = vmatprep.subr.mxu1 %v23_v15 }
  0x1f   :  { %265 = vmatpush3.msra.mxu0 %v23_v15  ;;  %310 = vmatpush3.msra.mxu1 %v23_v15 }
  0x20   :  { %266 = vmatprep.subr.mxu0 %v22_v16  ;;  %295 = vmatprep.subr.mxu1 %v22_v16 }
  0x21   :  { %267 = vmatpush3.msra.mxu0 %v22_v16  ;;  %311 = vmatpush3.msra.mxu1 %v22_v16 }
  0x22   :  { %268 = vmatprep.mubr.f32.mxu0 %v14_v17  ;;  %274 = vmatprep.mubr.f32.mxu1 %v18_v18 }
  0x23   :  { %269 = vmatmul.mubr.f32.vlgmr.msra.gmra.mxu0 %v15_v19  ;;  %275 = vmatmul.mubr.f32.vlgmr.msra.gmra.mxu1 %v19_v20 }
  0x24   :  { %271 = vmatprep.mubr.f32.mxu0 %v16_v21  ;;  %277 = vmatprep.mubr.f32.mxu1 %v20_v22 }
  0x25   :  { %58 = vperm.xlu1 %314, %v40_v23   ;;  %48 = vperm.xlu0 %313, %v38_v24  }
  0x27   :  { %272 = vmatmul.mubr.f32.gmra.mxu0 %v17_v25  ;;  %278 = vmatmul.mubr.f32.gmra.mxu1 %v21_v26 }
  0x29   :  { %63 = vperm.xlu1 %314, %v41_v27   ;;  %53 = vperm.xlu0 %313, %v39_v28  }
  0x2d   :  { %73 = vperm.xlu1 %314, %v43_v29   ;;  %68 = vperm.xlu0 %313, %v42_v30  }
  0x31   :  { %83 = vperm.xlu1 %314, %v45_v31   ;;  %78 = vperm.xlu0 %313, %v44_v32  }
  0xa0   :  { %v59_v33 = vpop.permute.xlu1 %58  ;;  %v49_v34 = vpop.permute.xlu0 %48 }
  0xa4   :  { %v64_v35 = vpop.permute.xlu1 %63  ;;  %v54_v36 = vpop.permute.xlu0 %53 }
  0xa8   :  { %v74_v37 = vpop.permute.xlu1 %73  ;;  %v69_v38 = vpop.permute.xlu0 %68 }
  0xac   :  { %v84_v45 = vpop.permute.xlu1 %83  ;;  %v79_v52 = vpop.permute.xlu0 %78 }
  0xe3   :  { %v270_v39 = vpop.f32.mrf.mxu0  ;;  %v276_v40 = vpop.f32.mrf.mxu1 }
  0xe4   :  { %v158_v41 = vadd.f32 %v270_v39, %v54_v36  ;;  %v178_v42 = vadd.f32 %v276_v40, %v74_v37 }
  0xe5   :  { %v152_v43 = vpop.f32.mrf.mxu0  ;;  %v172_v44 = vpop.f32.mrf.mxu1 }
  0xe6   :  { %v192_v46 = vmax.f32 %v158_v41, 0.0  ;;  %v196_v47 = vmax.f32 %v178_v42, 0.0  ;;  %v153_v48 = vadd.f32 %v152_v43, %v49_v34  ;;  %v173_v49 = vadd.f32 %v172_v44, %v69_v38 }
  0xe7   :  { %v273_v50 = vpop.f32.mrf.mxu0  ;;  %v279_v51 = vpop.f32.mrf.mxu1 }
  0xe8   :  { %201 = vst.msk [vmem:[%s467_s3 + $0x8] sm:$0xff] %vm199_vm0, %v192_v46  ;;  %205 = vst.msk [vmem:[%s467_s3 + $0x28] sm:$0xff] %vm199_vm0, %v196_v47  ;;  %v191_v53 = vmax.f32 %v153_v48, 0.0  ;;  %v195_v54 = vmax.f32 %v173_v49, 0.0  ;;  %v168_v55 = vadd.f32 %v273_v50, %v64_v35  ;;  %v188_v56 = vadd.f32 %v279_v51, %v84_v45 }
  0xe9   :  { %v162_v57 = vpop.f32.mrf.mxu0  ;;  %v182_v58 = vpop.f32.mrf.mxu1 }
  0xea   :  { %200 = vst.msk [vmem:[%s467_s3] sm:$0xff] %vm199_vm0, %v191_v53  ;;  %204 = vst.msk [vmem:[%s467_s3 + $0x20] sm:$0xff] %vm199_vm0, %v195_v54  ;;  %v194_v59 = vmax.f32 %v168_v55, 0.0  ;;  %v198_v60 = vmax.f32 %v188_v56, 0.0  ;;  %v163_v61 = vadd.f32 %v162_v57, %v59_v33  ;;  %v183_v62 = vadd.f32 %v182_v58, %v79_v52 }
  0xec   :  { %203 = vst.msk [vmem:[%s467_s3 + $0x18] sm:$0xff] %vm199_vm0, %v194_v59  ;;  %207 = vst.msk [vmem:[%s467_s3 + $0x38] sm:$0xff] %vm199_vm0, %v198_v60  ;;  %v193_v63 = vmax.f32 %v163_v61, 0.0  ;;  %v197_v0 = vmax.f32 %v183_v62, 0.0 }
  0xee   :  { %202 = vst.msk [vmem:[%s467_s3 + $0x10] sm:$0xff] %vm199_vm0, %v193_v63  ;;  %206 = vst.msk [vmem:[%s467_s3 + $0x30] sm:$0xff] %vm199_vm0, %v197_v0 }

// kernel: generator_forward.6
= control target key start
LH: loop header
LB: loop body
LE: loop exit
PB: predicated region body
PF: predicated region fallthrough
CT: control target
= control target key end

     0   :  { %s639_s12 = smov 0   ;;  %s641_s13 = smov 0   ;;  %s730_s0 = inlined_call_operand.vmem [shape: f32[4,256,32], index: 0, kind: input, shape index: {}]   ;;  %s731_s1 = inlined_call_operand.vmem [shape: f32[4,32,256], index: 1, kind: input, shape index: {}]   ;;  %s732_s2 = inlined_call_operand.vmem [shape: f32[32,1], index: 2, kind: input, shape index: {}]   ;;  %s733_s3 = inlined_call_operand.vmem [shape: f32[4,32,32], index: 3, kind: output, shape index: {}]  }
   0x1   :  { %s643_s14 = smov 0  }
   0x2 LB: > { %s25_s15 = sadd.s32 1, %s612_s13  ;;  %p479_p0 = scmp.ge.s32.totalorder %s616_s14, 1  ;;  %s616_s14 = sphi %s643_s14, %s13_s14   ;;  %s612_s13 = sphi %s641_s13, %s735_s13   ;;  %s608_s12 = sphi %s639_s12, %s734_s12  }
   0x3   : > { %p27_p1 = scmp.ge.s32.totalorder %s25_s15, 4  ;;  %p166_p2 = scmp.lt.s32.totalorder %s616_s14, 5 }
   0x5   : > { %s737_s15 = smov (%p27_p1, %s25_s15), 0  ;;  %p167_p3 = pnand %p479_p0, %p166_p2 }
   0x6   : > { %p201_p4 = scmp.lt.s32.totalorder (!%p167_p3), %s608_s12, 3 }
   0x7   : > { %170 = sbr.rel (%p167_p3) target bundleno = 256 (0x100), region = 32 }
   0xc   : > { %v264_v0 = vld [vmem:[%s732_s2 + $0x10] sm:$0xff]  ;;  %v262_v1 = vld [vmem:[%s732_s2] sm:$0xff]  ;;  %v618_v2 = vmov 0   ;;  %s739_s12 = smov (!%p201_p4, %s608_s12), 3  ;;  %v265_v3 = vld [vmem:[%s732_s2 + $0x18] sm:$0xff]  ;;  %vm375_vm0 = vcmask 261120  }
   0xd   : > { %593 = vset.pattern.permute.xlu1 %v618_v2  ;;  %592 = vset.pattern.permute.xlu0 %v618_v2  ;;  %v263_v4 = vld [vmem:[%s732_s2 + $0x8] sm:$0xff]  ;;  %s488_s24 = sshll.u32 %s739_s12, 8  ;;  %s489_s28 = sshll.u32 %s739_s12, 6 }
   0xe   : > { %278 = vperm.xlu1 %593, %v264_v0   ;;  %268 = vperm.xlu0 %592, %v262_v1   ;;  %s675_s27 = scalar_lea.vmem %s730_s0, %s488_s24  ;;  %s213_s4 = scalar_lea.vmem %s731_s1, %s489_s28 }
   0xf   : > { %v261_v5 = vld [vmem:[%s675_s27 + $0xf8] sm:$0xff]  ;;  %v260_v7 = vld [vmem:[%s675_s27 + $0xf0] sm:$0xff]  ;;  %v259_v9 = vld [vmem:[%s675_s27 + $0xe8] sm:$0xff]  ;;  %s490_s5 = sshll.u32 %s739_s12, 5 }
  0x10   : > { %v245_v6 = vld [vmem:[%s675_s27 + $0x78] sm:$0xff]  ;;  %491 = vmatprep.subr.mxu0 %v261_v5  ;;  %535 = vmatprep.subr.mxu1 %v261_v5  ;;  %v244_v8 = vld [vmem:[%s675_s27 + $0x70] sm:$0xff]  ;;  %v243_v10 = vld [vmem:[%s675_s27 + $0x68] sm:$0xff]  ;;  %s221_s8 = scalar_lea.vmem %s733_s3, %s490_s5 }
  0x11   : > { %492 = vmatpush3.msra.mxu0 %v245_v6  ;;  %551 = vmatpush3.msra.mxu1 %v245_v6  ;;  %v258_v11 = vld [vmem:[%s675_s27 + $0xe0] sm:$0xff]  ;;  %v257_v13 = vld [vmem:[%s675_s27 + $0xd8] sm:$0xff]  ;;  %v256_v15 = vld [vmem:[%s675_s27 + $0xd0] sm:$0xff] }
  0x12   : > { %283 = vperm.xlu1 %593, %v265_v3   ;;  %273 = vperm.xlu0 %592, %v263_v4   ;;  %v242_v12 = vld [vmem:[%s675_s27 + $0x60] sm:$0xff]  ;;  %v241_v14 = vld [vmem:[%s675_s27 + $0x58] sm:$0xff]  ;;  %v240_v16 = vld [vmem:[%s675_s27 + $0x50] sm:$0xff] }
  0x13   : > { %493 = vmatprep.subr.mxu0 %v260_v7  ;;  %536 = vmatprep.subr.mxu1 %v260_v7  ;;  %v255_v17 = vld [vmem:[%s675_s27 + $0xc8] sm:$0xff]  ;;  %v254_v19 = vld [vmem:[%s675_s27 + $0xc0] sm:$0xff]  ;;  %v253_v21 = vld [vmem:[%s675_s27 + $0xb8] sm:$0xff] }
  0x14   : > { %494 = vmatpush3.msra.mxu0 %v244_v8  ;;  %552 = vmatpush3.msra.mxu1 %v244_v8  ;;  %v239_v18 = vld [vmem:[%s675_s27 + $0x48] sm:$0xff]  ;;  %v238_v20 = vld [vmem:[%s675_s27 + $0x40] sm:$0xff]  ;;  %v237_v22 = vld [vmem:[%s675_s27 + $0x38] sm:$0xff] }
  0x15   : > { %495 = vmatprep.subr.mxu0 %v259_v9  ;;  %537 = vmatprep.subr.mxu1 %v259_v9  ;;  %v252_v23 = vld [vmem:[%s675_s27 + $0xb0] sm:$0xff]  ;;  %v251_v25 = vld [vmem:[%s675_s27 + $0xa8] sm:$0xff]  ;;  %v250_v27 = vld [vmem:[%s675_s27 + $0xa0] sm:$0xff] }
  0x16   : > { %496 = vmatpush3.msra.mxu0 %v243_v10  ;;  %553 = vmatpush3.msra.mxu1 %v243_v10  ;;  %v236_v24 = vld [vmem:[%s675_s27 + $0x30] sm:$0xff]  ;;  %v235_v26 = vld [vmem:[%s675_s27 + $0x28] sm:$0xff]  ;;  %v234_v28 = vld [vmem:[%s675_s27 + $0x20] sm:$0xff] }
  0x17   : > { %497 = vmatprep.subr.mxu0 %v258_v11  ;;  %538 = vmatprep.subr.mxu1 %v258_v11  ;;  %v249_v29 = vld [vmem:[%s675_s27 + $0x98] sm:$0xff]  ;;  %v248_v31 = vld [vmem:[%s675_s27 + $0x90] sm:$0xff]  ;;  %v247_v33 = vld [vmem:[%s675_s27 + $0x88] sm:$0xff] }
  0x18   : > { %498 = vmatpush3.msra.mxu0 %v242_v12  ;;  %554 = vmatpush3.msra.mxu1 %v242_v12  ;;  %v233_v30 = vld [vmem:[%s675_s27 + $0x18] sm:$0xff]  ;;  %v232_v32 = vld [vmem:[%s675_s27 + $0x10] sm:$0xff]  ;;  %v231_v34 = vld [vmem:[%s675_s27 + $0x8] sm:$0xff] }
  0x19   : > { %499 = vmatprep.subr.mxu0 %v257_v13  ;;  %539 = vmatprep.subr.mxu1 %v257_v13  ;;  %v246_v35 = vld [vmem:[%s675_s27 + $0x80] sm:$0xff]  ;;  %v223_v37 = vld [vmem:[%s213_s4 + $0x8] sm:$0xff]  ;;  %v225_v41 = vld [vmem:[%s213_s4 + $0x18] sm:$0xff] }
  0x1a   : > { %500 = vmatpush3.msra.mxu0 %v241_v14  ;;  %555 = vmatpush3.msra.mxu1 %v241_v14  ;;  %v230_v36 = vld [vmem:[%s675_s27] sm:$0xff]  ;;  %v227_v38 = vld [vmem:[%s213_s4 + $0x28] sm:$0xff]  ;;  %v229_v42 = vld [vmem:[%s213_s4 + $0x38] sm:$0xff] }
  0x1b   : > { %501 = vmatprep.subr.mxu0 %v256_v15  ;;  %540 = vmatprep.subr.mxu1 %v256_v15  ;;  %v222_v39 = vld [vmem:[%s213_s4] sm:$0xff]  ;;  %v224_v43 = vld [vmem:[%s213_s4 + $0x10] sm:$0xff] }
  0x1c   : > { %502 = vmatpush3.msra.mxu0 %v240_v16  ;;  %556 = vmatpush3.msra.mxu1 %v240_v16  ;;  %v226_v40 = vld [vmem:[%s213_s4 + $0x20] sm:$0xff]  ;;  %v228_v44 = vld [vmem:[%s213_s4 + $0x30] sm:$0xff] }
  0x1d   : > { %503 = vmatprep.subr.mxu0 %v255_v17  ;;  %541 = vmatprep.subr.mxu1 %v255_v17 }
  0x1e   : > { %504 = vmatpush3.msra.mxu0 %v239_v18  ;;  %557 = vmatpush3.msra.mxu1 %v239_v18 }
  0x1f   : > { %505 = vmatprep.subr.mxu0 %v254_v19  ;;  %542 = vmatprep.subr.mxu1 %v254_v19 }
  0x20   : > { %506 = vmatpush3.msra.mxu0 %v238_v20  ;;  %558 = vmatpush3.msra.mxu1 %v238_v20 }
  0x21   : > { %507 = vmatprep.subr.mxu0 %v253_v21  ;;  %543 = vmatprep.subr.mxu1 %v253_v21 }
  0x22   : > { %508 = vmatpush3.msra.mxu0 %v237_v22  ;;  %559 = vmatpush3.msra.mxu1 %v237_v22 }
  0x23   : > { %509 = vmatprep.subr.mxu0 %v252_v23  ;;  %544 = vmatprep.subr.mxu1 %v252_v23 }
  0x24   : > { %510 = vmatpush3.msra.mxu0 %v236_v24  ;;  %560 = vmatpush3.msra.mxu1 %v236_v24 }
  0x25   : > { %511 = vmatprep.subr.mxu0 %v251_v25  ;;  %545 = vmatprep.subr.mxu1 %v251_v25 }
  0x26   : > { %512 = vmatpush3.msra.mxu0 %v235_v26  ;;  %561 = vmatpush3.msra.mxu1 %v235_v26 }
  0x27   : > { %513 = vmatprep.subr.mxu0 %v250_v27  ;;  %546 = vmatprep.subr.mxu1 %v250_v27 }
  0x28   : > { %514 = vmatpush3.msra.mxu0 %v234_v28  ;;  %562 = vmatpush3.msra.mxu1 %v234_v28 }
  0x29   : > { %515 = vmatprep.subr.mxu0 %v249_v29  ;;  %547 = vmatprep.subr.mxu1 %v249_v29 }
  0x2a   : > { %516 = vmatpush3.msra.mxu0 %v233_v30  ;;  %563 = vmatpush3.msra.mxu1 %v233_v30 }
  0x2b   : > { %517 = vmatprep.subr.mxu0 %v248_v31  ;;  %548 = vmatprep.subr.mxu1 %v248_v31 }
  0x2c   : > { %518 = vmatpush3.msra.mxu0 %v232_v32  ;;  %564 = vmatpush3.msra.mxu1 %v232_v32 }
  0x2d   : > { %519 = vmatprep.subr.mxu0 %v247_v33  ;;  %549 = vmatprep.subr.mxu1 %v247_v33 }
  0x2e   : > { %520 = vmatpush3.msra.mxu0 %v231_v34  ;;  %565 = vmatpush3.msra.mxu1 %v231_v34 }
  0x2f   : > { %521 = vmatprep.subr.mxu0 %v246_v35  ;;  %550 = vmatprep.subr.mxu1 %v246_v35 }
  0x30   : > { %522 = vmatpush3.msra.mxu0 %v230_v36  ;;  %566 = vmatpush3.msra.mxu1 %v230_v36 }
  0x31   : > { %350 = vmatprep.mubr.f32.mxu0 %v223_v37  ;;  %360 = vmatprep.mubr.f32.mxu1 %v227_v38 }
  0x32   : > { %351 = vmatmul.mubr.f32.vlgmr.msra.gmra.mxu0 %v222_v39  ;;  %361 = vmatmul.mubr.f32.vlgmr.msra.gmra.mxu1 %v226_v40 }
  0x33   : > { %355 = vmatprep.mubr.f32.mxu0 %v225_v41  ;;  %365 = vmatprep.mubr.f32.mxu1 %v229_v42 }
  0x36   : > { %356 = vmatmul.mubr.f32.gmra.mxu0 %v224_v43  ;;  %366 = vmatmul.mubr.f32.gmra.mxu1 %v228_v44 }
  0x89   : > { %v279_v47 = vpop.permute.xlu1 %278  ;;  %v269_v48 = vpop.permute.xlu0 %268 }
  0x8d   : > { %v284_v63 = vpop.permute.xlu1 %283  ;;  %v274_v0 = vpop.permute.xlu0 %273 }
  0xf2   : > { %v523_v45 = vpop.f32.mrf.mxu0  ;;  %v529_v46 = vpop.f32.mrf.mxu1 }
  0xf4   : > { %v524_v49 = vpop.f32.mrf.mxu0  ;;  %v530_v50 = vpop.f32.mrf.mxu1 }
  0xf5   : > { %v525_v51 = vadd.f32 %v524_v49, %v523_v45  ;;  %v531_v52 = vadd.f32 %v530_v50, %v529_v46 }
  0xf6   : > { %v526_v53 = vpop.f32.mrf.mxu0  ;;  %v532_v54 = vpop.f32.mrf.mxu1 }
  0xf7   : > { %v353_v55 = vadd.f32 %v525_v51, %v269_v48  ;;  %v363_v56 = vadd.f32 %v531_v52, %v279_v47 }
  0xf8   : > { %v527_v57 = vpop.f32.mrf.mxu0  ;;  %v533_v58 = vpop.f32.mrf.mxu1 }
  0xf9   : > { %v371_v59 = vmax.f32 %v353_v55, 0.0  ;;  %v373_v60 = vmax.f32 %v363_v56, 0.0  ;;  %v528_v61 = vadd.f32 %v527_v57, %v526_v53  ;;  %v534_v62 = vadd.f32 %v533_v58, %v532_v54 }
  0xfb   : > { %376 = vst.msk [vmem:[%s221_s8] sm:$0xff] %vm375_vm0, %v371_v59  ;;  %378 = vst.msk [vmem:[%s221_s8 + $0x10] sm:$0xff] %vm375_vm0, %v373_v60  ;;  %v358_v1 = vadd.f32 %v528_v61, %v274_v0  ;;  %v368_v2 = vadd.f32 %v534_v62, %v284_v63 }
  0xfd   : > { %v372_v3 = vmax.f32 %v358_v1, 0.0  ;;  %v374_v4 = vmax.f32 %v368_v2, 0.0 }
  0xff   : > { %377 = vst.msk [vmem:[%s221_s8 + $0x8] sm:$0xff] %vm375_vm0, %v372_v3  ;;  %379 = vst.msk [vmem:[%s221_s8 + $0x18] sm:$0xff] %vm375_vm0, %v374_v4 }
 0x100 PF: > { %s13_s14 = sadd.s32 1, %s616_s14   ;;  %s734_s12 = smov %s612_s13 }
 0x101   : > { %p10_p5 = scmp.ge.s32.totalorder %s13_s14, 6   ;;  %s735_s13 = smov %s737_s15 }
 0x103   :  { %12 = sbr.rel (!%p10_p5) target bundleno = 2 (0x2), region = 65 }

// kernel: generator_forward.7
= control target key start
LH: loop header
LB: loop body
LE: loop exit
PB: predicated region body
PF: predicated region fallthrough
CT: control target
= control target key end

     0   :  { %s566_s12 = smov 0   ;;  %s568_s13 = smov 0   ;;  %s638_s0 = inlined_call_operand.vmem [shape: f32[4,128,128], index: 0, kind: input, shape index: {}]   ;;  %s639_s1 = inlined_call_operand.vmem [shape: f32[4,16,128], index: 1, kind: input, shape index: {}]   ;;  %s640_s2 = inlined_call_operand.vmem [shape: f32[16,1], index: 2, kind: input, shape index: {}]   ;;  %s641_s3 = inlined_call_operand.vmem [shape: f32[4,16,128], index: 3, kind: output, shape index: {}]  }
   0x1   :  { %s570_s14 = smov 0  }
   0x2 LB: > { %s25_s15 = sadd.s32 1, %s539_s13  ;;  %p430_p0 = scmp.ge.s32.totalorder %s543_s14, 1  ;;  %s543_s14 = sphi %s570_s14, %s13_s14   ;;  %s539_s13 = sphi %s568_s13, %s643_s13   ;;  %s535_s12 = sphi %s566_s12, %s642_s12  }
   0x3   : > { %p27_p1 = scmp.ge.s32.totalorder %s25_s15, 4  ;;  %p166_p2 = scmp.lt.s32.totalorder %s543_s14, 5 }
   0x5   : > { %s645_s15 = smov (%p27_p1, %s25_s15), 0  ;;  %p167_p3 = pnand %p430_p0, %p166_p2 }
   0x6   : > { %p201_p4 = scmp.lt.s32.totalorder (!%p167_p3), %s535_s12, 3 }
   0x7   : > { %170 = sbr.rel (%p167_p3) target bundleno = 248 (0xf8), region = 32 }
   0xc   : > { %v240_v0 = vld [vmem:[%s640_s2] sm:$0xff]  ;;  %v545_v1 = vmov 0   ;;  %s647_s12 = smov (!%p201_p4, %s535_s12), 3  ;;  %v241_v2 = vld [vmem:[%s640_s2 + $0x8] sm:$0xff] }
   0xd   : > { %520 = vset.pattern.permute.xlu0 %v545_v1  ;;  %s439_s20 = sshll.u32 %s647_s12, 7  ;;  %s440_s24 = sshll.u32 %s647_s12, 4 }
   0xe   : > { %244 = vperm.xlu0 %520, %v240_v0   ;;  %s596_s23 = scalar_lea.vmem %s638_s0, %s439_s20  ;;  %s607_s27 = scalar_lea.vmem %s639_s1, %s440_s24 }
   0xf   : > { %v239_v3 = vld [vmem:[%s596_s23 + $0x78] sm:$0xff]  ;;  %v238_v4 = vld [vmem:[%s596_s23 + $0x70] sm:$0xff]  ;;  %v237_v5 = vld [vmem:[%s596_s23 + $0x68] sm:$0xff]  ;;  %s221_s30 = scalar_lea.vmem %s641_s3, %s440_s24 }
  0x10   : > { %460 = vmatprep.subr.mxu0 %v239_v3  ;;  %v236_v6 = vld [vmem:[%s596_s23 + $0x60] sm:$0xff]  ;;  %v235_v8 = vld [vmem:[%s596_s23 + $0x58] sm:$0xff]  ;;  %v234_v9 = vld [vmem:[%s596_s23 + $0x50] sm:$0xff] }
  0x11   : > { %461 = vmatpush3.msra.mxu0 %v239_v3  ;;  %v222_v7 = vld [vmem:[%s607_s27] sm:$0xff]  ;;  %v233_v10 = vld [vmem:[%s596_s23 + $0x48] sm:$0xff]  ;;  %v231_v12 = vld [vmem:[%s596_s23 + $0x38] sm:$0xff] }
  0x12   : > { %249 = vperm.xlu0 %520, %v241_v2   ;;  %462 = vmatprep.subr.mxu0 %v238_v4  ;;  %v232_v11 = vld [vmem:[%s596_s23 + $0x40] sm:$0xff]  ;;  %v230_v13 = vld [vmem:[%s596_s23 + $0x30] sm:$0xff]  ;;  %v229_v14 = vld [vmem:[%s596_s23 + $0x28] sm:$0xff] }
  0x13   : > { %463 = vmatpush3.msra.mxu0 %v238_v4  ;;  %492 = vmatprep.mubr.f32.mxu0 %v222_v7  ;;  %v228_v15 = vld [vmem:[%s596_s23 + $0x20] sm:$0xff]  ;;  %v227_v16 = vld [vmem:[%s596_s23 + $0x18] sm:$0xff]  ;;  %v226_v17 = vld [vmem:[%s596_s23 + $0x10] sm:$0xff] }
  0x14   : > { %464 = vmatprep.subr.mxu0 %v237_v5  ;;  %v225_v18 = vld [vmem:[%s596_s23 + $0x8] sm:$0xff]  ;;  %v224_v19 = vld [vmem:[%s596_s23] sm:$0xff] }
  0x15   : > { %465 = vmatpush3.msra.mxu0 %v237_v5  ;;  %v223_v20 = vld [vmem:[%s607_s27 + $0x8] sm:$0xff] }
  0x16   : > { %466 = vmatprep.subr.mxu0 %v236_v6 }
  0x17   : > { %467 = vmatpush3.msra.mxu0 %v236_v6 }
  0x18   : > { %468 = vmatprep.subr.mxu0 %v235_v8 }
  0x19   : > { %469 = vmatpush3.msra.mxu0 %v235_v8 }
  0x1a   : > { %470 = vmatprep.subr.mxu0 %v234_v9 }
  0x1b   : > { %471 = vmatpush3.msra.mxu0 %v234_v9 }
  0x1c   : > { %472 = vmatprep.subr.mxu0 %v233_v10 }
  0x1d   : > { %473 = vmatpush3.msra.mxu0 %v233_v10 }
  0x1e   : > { %474 = vmatprep.subr.mxu0 %v232_v11 }
  0x1f   : > { %475 = vmatpush3.msra.mxu0 %v232_v11 }
  0x20   : > { %476 = vmatprep.subr.mxu0 %v231_v12 }
  0x21   : > { %477 = vmatpush3.msra.mxu0 %v231_v12 }
  0x22   : > { %478 = vmatprep.subr.mxu0 %v230_v13 }
  0x23   : > { %479 = vmatpush3.msra.mxu0 %v230_v13 }
  0x24   : > { %480 = vmatprep.subr.mxu0 %v229_v14 }
  0x25   : > { %481 = vmatpush3.msra.mxu0 %v229_v14 }
  0x26   : > { %482 = vmatprep.subr.mxu0 %v228_v15 }
  0x27   : > { %483 = vmatpush3.msra.mxu0 %v228_v15 }
  0x28   : > { %484 = vmatprep.subr.mxu0 %v227_v16 }
  0x29   : > { %485 = vmatpush3.msra.mxu0 %v227_v16 }
  0x2a   : > { %486 = vmatprep.subr.mxu0 %v226_v17 }
  0x2b   : > { %487 = vmatpush3.msra.mxu0 %v226_v17 }
  0x2c   : > { %488 = vmatprep.subr.mxu0 %v225_v18 }
  0x2d   : > { %489 = vmatpush3.msra.mxu0 %v225_v18 }
  0x2e   : > { %490 = vmatprep.subr.mxu0 %v224_v19 }
  0x2f   : > { %491 = vmatpush3.msra.mxu0 %v224_v19 }
  0x30   : > { %493 = vmatmul.mubr.f32.vlgmr.msra.gmra.mxu0 %v223_v20 }
  0x89   : > { %v245_v21 = vpop.permute.xlu0 %244 }
  0x8d   : > { %v250_v22 = vpop.permute.xlu0 %249 }
  0xf0   : > { %v494_v23 = vpop.f32.mrf.mxu0 }
  0xf1   : > { %v324_v24 = vadd.f32 %v494_v23, %v250_v22 }
  0xf2   : > { %v318_v25 = vpop.f32.mrf.mxu0 }
  0xf3   : > { %v328_v26 = vmax.f32 %v324_v24, 0.0  ;;  %v319_v27 = vadd.f32 %v318_v25, %v245_v21 }
  0xf5   : > { %330 = vst [vmem:[%s221_s30 + $0x8] sm:$0xff] %v328_v26  ;;  %v327_v28 = vmax.f32 %v319_v27, 0.0 }
  0xf7   : > { %329 = vst [vmem:[%s221_s30] sm:$0xff] %v327_v28 }
  0xf8 PF: > { %s13_s14 = sadd.s32 1, %s543_s14   ;;  %s642_s12 = smov %s539_s13 }
  0xf9   : > { %p10_p5 = scmp.ge.s32.totalorder %s13_s14, 6   ;;  %s643_s13 = smov %s645_s15 }
  0xfb   :  { %12 = sbr.rel (!%p10_p5) target bundleno = 2 (0x2), region = 65 }

// kernel: generator_forward.8
= control target key start
LH: loop header
LB: loop body
LE: loop exit
PB: predicated region body
PF: predicated region fallthrough
CT: control target
= control target key end

     0   :  { %s608_s12 = smov 0   ;;  %s610_s13 = smov 0   ;;  %s686_s0 = inlined_call_operand.vmem [shape: f32[4,64,512], index: 0, kind: input, shape index: {}]   ;;  %s687_s1 = inlined_call_operand.vmem [shape: f32[4,8,64], index: 1, kind: input, shape index: {}]   ;;  %s688_s2 = inlined_call_operand.vmem [shape: f32[8,1], index: 2, kind: input, shape index: {}]   ;;  %s689_s3 = inlined_call_operand.vmem [shape: f32[4,8,512], index: 3, kind: output, shape index: {}]  }
   0x1   :  { %s612_s14 = smov 0  }
   0x2 LB: > { %s25_s15 = sadd.s32 1, %s580_s13  ;;  %p523_p0 = scmp.ge.s32.totalorder %s584_s14, 1  ;;  %s584_s14 = sphi %s612_s14, %s13_s14   ;;  %s580_s13 = sphi %s610_s13, %s691_s13   ;;  %s576_s12 = sphi %s608_s12, %s690_s12  }
   0x3   : > { %p27_p1 = scmp.ge.s32.totalorder %s25_s15, 4  ;;  %p167_p2 = scmp.lt.s32.totalorder %s584_s14, 5 }
   0x5   : > { %s693_s15 = smov (%p27_p1, %s25_s15), 0  ;;  %p168_p3 = pnand %p523_p0, %p167_p2 }
   0x6   : > { %p204_p4 = scmp.lt.s32.totalorder (!%p168_p3), %s576_s12, 3 }
   0x7   : > { %171 = sbr.rel (%p168_p3) target bundleno = 232 (0xe8), region = 32 }
   0xc   : > { %v260_v0 = vld [vmem:[%s688_s2] sm:$0xff]  ;;  %v586_v1 = vmov 0.0   ;;  %s695_s12 = smov (!%p204_p4, %s576_s12), 3  ;;  %v587_v2 = vmov 0   ;;  %vm266_vm0 = vcmask 523264  }
   0xd   : > { %334 = vmatprep.mubr.f32.mxu0 %v586_v1  ;;  %405 = vmatprep.mubr.f32.mxu1 %v586_v1  ;;  %s533_s18 = sshll.u32 %s695_s12, 8  ;;  %s526_s22 = sshll.u32 %s695_s12, 3 }
   0xe   : > { %561 = vset.pattern.permute.xlu0 %v587_v2  ;;  %s635_s21 = scalar_lea.vmem %s686_s0, %s533_s18  ;;  %s216_s25 = scalar_lea.vmem %s687_s1, %s526_s22 }
   0xf   : > { %263 = vperm.xlu0 %561, %v260_v0   ;;  %v257_v3 = vld [vmem:[%s635_s21 + $0xe8] sm:$0xff]  ;;  %v259_v4 = vld [vmem:[%s635_s21 + $0xf8] sm:$0xff]  ;;  %v256_v5 = vld [vmem:[%s635_s21 + $0xe0] sm:$0xff]  ;;  %s534_s26 = sshll.u32 %s695_s12, 5 }
  0x10   : > { %286 = vmatprep.subr.mxu0 %v257_v3  ;;  %357 = vmatprep.subr.mxu1 %v259_v4  ;;  %v258_v6 = vld [vmem:[%s635_s21 + $0xf0] sm:$0xff]  ;;  %v253_v7 = vld [vmem:[%s635_s21 + $0xc8] sm:$0xff]  ;;  %v255_v8 = vld [vmem:[%s635_s21 + $0xd8] sm:$0xff]  ;;  %s225_s29 = scalar_lea.vmem %s689_s3, %s534_s26 }
  0x11   : > { %287 = vmatpush1.msra.mxu0 %v256_v5  ;;  %358 = vmatpush1.msra.mxu1 %v258_v6  ;;  %v252_v9 = vld [vmem:[%s635_s21 + $0xc0] sm:$0xff]  ;;  %v254_v10 = vld [vmem:[%s635_s21 + $0xd0] sm:$0xff]  ;;  %v249_v11 = vld [vmem:[%s635_s21 + $0xa8] sm:$0xff] }
  0x12   : > { %288 = vmatprep.subr.mxu0 %v253_v7  ;;  %359 = vmatprep.subr.mxu1 %v255_v8  ;;  %v251_v12 = vld [vmem:[%s635_s21 + $0xb8] sm:$0xff]  ;;  %v248_v13 = vld [vmem:[%s635_s21 + $0xa0] sm:$0xff]  ;;  %v250_v14 = vld [vmem:[%s635_s21 + $0xb0] sm:$0xff] }
  0x13   : > { %289 = vmatpush1.msra.mxu0 %v252_v9  ;;  %360 = vmatpush1.msra.mxu1 %v254_v10  ;;  %v245_v15 = vld [vmem:[%s635_s21 + $0x88] sm:$0xff]  ;;  %v247_v16 = vld [vmem:[%s635_s21 + $0x98] sm:$0xff]  ;;  %v244_v17 = vld [vmem:[%s635_s21 + $0x80] sm:$0xff] }
  0x14   : > { %290 = vmatprep.subr.mxu0 %v249_v11  ;;  %361 = vmatprep.subr.mxu1 %v251_v12  ;;  %v246_v18 = vld [vmem:[%s635_s21 + $0x90] sm:$0xff]  ;;  %v241_v19 = vld [vmem:[%s635_s21 + $0x68] sm:$0xff]  ;;  %v243_v20 = vld [vmem:[%s635_s21 + $0x78] sm:$0xff] }
  0x15   : > { %291 = vmatpush1.msra.mxu0 %v248_v13  ;;  %362 = vmatpush1.msra.mxu1 %v250_v14  ;;  %v240_v21 = vld [vmem:[%s635_s21 + $0x60] sm:$0xff]  ;;  %v242_v22 = vld [vmem:[%s635_s21 + $0x70] sm:$0xff]  ;;  %v237_v23 = vld [vmem:[%s635_s21 + $0x48] sm:$0xff] }
  0x16   : > { %292 = vmatprep.subr.mxu0 %v245_v15  ;;  %363 = vmatprep.subr.mxu1 %v247_v16  ;;  %v239_v24 = vld [vmem:[%s635_s21 + $0x58] sm:$0xff]  ;;  %v236_v25 = vld [vmem:[%s635_s21 + $0x40] sm:$0xff]  ;;  %v238_v26 = vld [vmem:[%s635_s21 + $0x50] sm:$0xff] }
  0x17   : > { %293 = vmatpush1.msra.mxu0 %v244_v17  ;;  %364 = vmatpush1.msra.mxu1 %v246_v18  ;;  %v233_v27 = vld [vmem:[%s635_s21 + $0x28] sm:$0xff]  ;;  %v235_v28 = vld [vmem:[%s635_s21 + $0x38] sm:$0xff]  ;;  %v232_v29 = vld [vmem:[%s635_s21 + $0x20] sm:$0xff] }
  0x18   : > { %294 = vmatprep.subr.mxu0 %v241_v19  ;;  %365 = vmatprep.subr.mxu1 %v243_v20  ;;  %v234_v30 = vld [vmem:[%s635_s21 + $0x30] sm:$0xff]  ;;  %v229_v31 = vld [vmem:[%s635_s21 + $0x8] sm:$0xff]  ;;  %v231_v32 = vld [vmem:[%s635_s21 + $0x18] sm:$0xff] }
  0x19   : > { %295 = vmatpush1.msra.mxu0 %v240_v21  ;;  %366 = vmatpush1.msra.mxu1 %v242_v22  ;;  %v228_v33 = vld [vmem:[%s635_s21] sm:$0xff]  ;;  %v230_v34 = vld [vmem:[%s635_s21 + $0x10] sm:$0xff] }
  0x1a   : > { %296 = vmatprep.subr.mxu0 %v237_v23  ;;  %367 = vmatprep.subr.mxu1 %v239_v24  ;;  %v227_v35 = vld [vmem:[%s216_s25] sm:$0xff] }
  0x1b   : > { %297 = vmatpush1.msra.mxu0 %v236_v25  ;;  %368 = vmatpush1.msra.mxu1 %v238_v26 }
  0x1c   : > { %298 = vmatprep.subr.mxu0 %v233_v27  ;;  %369 = vmatprep.subr.mxu1 %v235_v28 }
  0x1d   : > { %299 = vmatpush1.msra.mxu0 %v232_v29  ;;  %370 = vmatpush1.msra.mxu1 %v234_v30 }
  0x1e   : > { %300 = vmatprep.subr.mxu0 %v229_v31  ;;  %371 = vmatprep.subr.mxu1 %v231_v32 }
  0x1f   : > { %301 = vmatpush1.msra.mxu0 %v228_v33  ;;  %372 = vmatpush1.msra.mxu1 %v230_v34 }
  0x20   : > { %529 = vmatmul.mubr.msk.f32.vlgmr.msra.gmra.mxu0 %vm266_vm0, %v227_v35  ;;  %530 = vmatmul.mubr.msk.f32.vlgmr.msra.gmra.mxu1 %vm266_vm0, %v227_v35 }
  0x8a   : > { %v264_v36 = vpop.permute.xlu0 %263 }
  0xe0   : > { %v336_v37 = vpop.f32.mrf.mxu0  ;;  %v407_v38 = vpop.f32.mrf.mxu1 }
  0xe1   : > { %v337_v39 = vadd.f32 %v336_v37, %v264_v36  ;;  %v408_v40 = vadd.f32 %v407_v38, %v264_v36 }
  0xe2   : > { %v338_v41 = vpop.f32.mrf.mxu0  ;;  %v409_v42 = vpop.f32.mrf.mxu1 }
  0xe3   : > { %v412_v43 = vmax.f32 %v337_v39, 0.0  ;;  %v414_v44 = vmax.f32 %v408_v40, 0.0  ;;  %v339_v45 = vadd.f32 %v338_v41, %v264_v36  ;;  %v410_v46 = vadd.f32 %v409_v42, %v264_v36 }
  0xe5   : > { %416 = vst [vmem:[%s225_s29] sm:$0xff] %v412_v43  ;;  %418 = vst [vmem:[%s225_s29 + $0x10] sm:$0xff] %v414_v44  ;;  %v413_v47 = vmax.f32 %v339_v45, 0.0  ;;  %v415_v48 = vmax.f32 %v410_v46, 0.0 }
  0xe7   : > { %417 = vst [vmem:[%s225_s29 + $0x8] sm:$0xff] %v413_v47  ;;  %419 = vst [vmem:[%s225_s29 + $0x18] sm:$0xff] %v415_v48 }
  0xe8 PF: > { %s13_s14 = sadd.s32 1, %s584_s14   ;;  %s690_s12 = smov %s580_s13 }
  0xe9   : > { %p10_p5 = scmp.ge.s32.totalorder %s13_s14, 6   ;;  %s691_s13 = smov %s693_s15 }
  0xeb   :  { %12 = sbr.rel (!%p10_p5) target bundleno = 2 (0x2), region = 65 }

// kernel: squeeze.26
= control target key start
LH: loop header
LB: loop body
LE: loop exit
PB: predicated region body
PF: predicated region fallthrough
CT: control target
= control target key end

     0   :  { %vm79_vm0 = vcmask 1047556   ;;  %s579_s14 = smov 112   ;;  %s580_s10 = smov 96   ;;  %vm3_vm1 = vcmask 130048   ;;  %s1160_s0 = inlined_call_operand.vmem [shape: f32[1,8,512], index: 0, kind: input, shape index: {}]   ;;  %s1161_s1 = inlined_call_operand.vmem [shape: f32[8,2,16,16], index: 1, kind: output, shape index: {}]  }
   0x1   :  { %v474_v0 = vld [vmem:[%s1160_s0 + $0x4] ss:$8 sm:$0xf]   ;;  %v475_v1 = vld [vmem:[%s1160_s0 - $0x1b] ss:$8 sm:$0xf0]  }
   0x2   :  { %v106_v2 = vsel %vm79_vm0, %v475_v1, %v474_v0  ;;  %v76_v3 = vld [vmem:[%s1160_s0] ss:$8 sm:$0xf]   ;;  %v467_v4 = vld [vmem:[%s1160_s0 - $0x1f] ss:$8 sm:$0xf0]  }
   0x3   :  { %107 = vrot.lane.b32.xlu1 %v106_v2, %s579_s14  ;;  %v80_v5 = vsel %vm79_vm0, %v467_v4, %v76_v3  ;;  %v478_v6 = vld [vmem:[%s1160_s0 + $0x6] ss:$8 sm:$0xf]   ;;  %v479_v7 = vld [vmem:[%s1160_s0 - $0x19] ss:$8 sm:$0xf0]  }
   0x4   :  { %81 = vrot.lane.b32.xlu0 %v80_v5, %s579_s14  ;;  %v119_v8 = vsel %vm79_vm0, %v479_v7, %v478_v6  ;;  %v470_v9 = vld [vmem:[%s1160_s0 + $0x2] ss:$8 sm:$0xf]   ;;  %v471_v10 = vld [vmem:[%s1160_s0 - $0x1d] ss:$8 sm:$0xf0]  }
   0x5   :  { %v93_v11 = vsel %vm79_vm0, %v471_v10, %v470_v9  ;;  %v485_v12 = vld [vmem:[%s1160_s0 + $0x2] ss:$8 sm:$0xf]   ;;  %v486_v13 = vld [vmem:[%s1160_s0 - $0x1d] ss:$8 sm:$0xf0]  }
   0x6   :  { %v127_v14 = vld [vmem:[%s1160_s0] ss:$8 sm:$0xf]   ;;  %v482_v15 = vld [vmem:[%s1160_s0 - $0x1f] ss:$8 sm:$0xf0]   ;;  %v144_v16 = vsel %vm79_vm0, %v486_v13, %v485_v12 }
   0x7   :  { %120 = vrot.lane.b32.xlu1 %v119_v8, %s579_s14  ;;  %v131_v17 = vsel %vm79_vm0, %v482_v15, %v127_v14  ;;  %v493_v18 = vld [vmem:[%s1160_s0 + $0x6] ss:$8 sm:$0xf]   ;;  %v494_v19 = vld [vmem:[%s1160_s0 - $0x19] ss:$8 sm:$0xf0]  }
   0x8   :  { %94 = vrot.lane.b32.xlu0 %v93_v11, %s579_s14  ;;  %v489_v20 = vld [vmem:[%s1160_s0 + $0x4] ss:$8 sm:$0xf]   ;;  %v490_v21 = vld [vmem:[%s1160_s0 - $0x1b] ss:$8 sm:$0xf0]   ;;  %v170_v22 = vsel %vm79_vm0, %v494_v19, %v493_v18 }
   0x9   :  { %v157_v23 = vsel %vm79_vm0, %v490_v21, %v489_v20  ;;  %v500_v24 = vld [vmem:[%s1160_s0 + $0x2] ss:$8 sm:$0xf]   ;;  %v501_v25 = vld [vmem:[%s1160_s0 - $0x1d] ss:$8 sm:$0xf0]  }
   0xa   :  { %v178_v26 = vld [vmem:[%s1160_s0] ss:$8 sm:$0xf]   ;;  %v497_v27 = vld [vmem:[%s1160_s0 - $0x1f] ss:$8 sm:$0xf0]   ;;  %v195_v28 = vsel %vm79_vm0, %v501_v25, %v500_v24 }
   0xb   :  { %145 = vrot.lane.b32.xlu1 %v144_v16, %s580_s10  ;;  %v182_v29 = vsel %vm79_vm0, %v497_v27, %v178_v26  ;;  %v508_v30 = vld [vmem:[%s1160_s0 + $0x6] ss:$8 sm:$0xf]   ;;  %v509_v31 = vld [vmem:[%s1160_s0 - $0x19] ss:$8 sm:$0xf0]  }
   0xc   :  { %132 = vrot.lane.b32.xlu0 %v131_v17, %s580_s10  ;;  %v504_v32 = vld [vmem:[%s1160_s0 + $0x4] ss:$8 sm:$0xf]   ;;  %v505_v33 = vld [vmem:[%s1160_s0 - $0x1b] ss:$8 sm:$0xf0]   ;;  %v221_v34 = vsel %vm79_vm0, %v509_v31, %v508_v30 }
   0xd   :  { %s581_s27 = smov 80   ;;  %v208_v35 = vsel %vm79_vm0, %v505_v33, %v504_v32  ;;  %v515_v36 = vld [vmem:[%s1160_s0 + $0x2] ss:$8 sm:$0xf]   ;;  %s582_s15 = smov 64  }
   0xe   :  { %v516_v37 = vld [vmem:[%s1160_s0 - $0x1d] ss:$8 sm:$0xf0]   ;;  %v229_v38 = vld [vmem:[%s1160_s0] ss:$8 sm:$0xf]  }
   0xf   :  { %171 = vrot.lane.b32.xlu1 %v170_v22, %s580_s10  ;;  %v512_v39 = vld [vmem:[%s1160_s0 - $0x1f] ss:$8 sm:$0xf0]   ;;  %v246_v40 = vsel %vm79_vm0, %v516_v37, %v515_v36  ;;  %v523_v42 = vld [vmem:[%s1160_s0 + $0x6] ss:$8 sm:$0xf]  }
  0x10   :  { %158 = vrot.lane.b32.xlu0 %v157_v23, %s580_s10  ;;  %v233_v41 = vsel %vm79_vm0, %v512_v39, %v229_v38  ;;  %v524_v43 = vld [vmem:[%s1160_s0 - $0x19] ss:$8 sm:$0xf0]   ;;  %v519_v44 = vld [vmem:[%s1160_s0 + $0x4] ss:$8 sm:$0xf]  }
  0x11   :  { %v520_v45 = vld [vmem:[%s1160_s0 - $0x1b] ss:$8 sm:$0xf0]   ;;  %v272_v46 = vsel %vm79_vm0, %v524_v43, %v523_v42  ;;  %v530_v48 = vld [vmem:[%s1160_s0 + $0x2] ss:$8 sm:$0xf]  }
  0x12   :  { %v259_v47 = vsel %vm79_vm0, %v520_v45, %v519_v44  ;;  %v531_v49 = vld [vmem:[%s1160_s0 - $0x1d] ss:$8 sm:$0xf0]   ;;  %v280_v50 = vld [vmem:[%s1160_s0] ss:$8 sm:$0xf]  }
  0x13   :  { %196 = vrot.lane.b32.xlu1 %v195_v28, %s581_s27  ;;  %v527_v51 = vld [vmem:[%s1160_s0 - $0x1f] ss:$8 sm:$0xf0]   ;;  %v297_v52 = vsel %vm79_vm0, %v531_v49, %v530_v48  ;;  %v538_v54 = vld [vmem:[%s1160_s0 + $0x6] ss:$8 sm:$0xf]  }
  0x14   :  { %183 = vrot.lane.b32.xlu0 %v182_v29, %s581_s27  ;;  %v284_v53 = vsel %vm79_vm0, %v527_v51, %v280_v50  ;;  %v539_v55 = vld [vmem:[%s1160_s0 - $0x19] ss:$8 sm:$0xf0]   ;;  %v534_v56 = vld [vmem:[%s1160_s0 + $0x4] ss:$8 sm:$0xf]  }
  0x15   :  { %v535_v57 = vld [vmem:[%s1160_s0 - $0x1b] ss:$8 sm:$0xf0]   ;;  %s583_s3 = smov 48   ;;  %v323_v58 = vsel %vm79_vm0, %v539_v55, %v538_v54  ;;  %s584_s26 = smov 32  }
  0x16   :  { %v310_v59 = vsel %vm79_vm0, %v535_v57, %v534_v56  ;;  %v545_v60 = vld [vmem:[%s1160_s0 + $0x2] ss:$8 sm:$0xf]   ;;  %v546_v61 = vld [vmem:[%s1160_s0 - $0x1d] ss:$8 sm:$0xf0]  }
  0x17   :  { %222 = vrot.lane.b32.xlu1 %v221_v34, %s581_s27  ;;  %v331_v62 = vld [vmem:[%s1160_s0] ss:$8 sm:$0xf]   ;;  %v542_v63 = vld [vmem:[%s1160_s0 - $0x1f] ss:$8 sm:$0xf0]   ;;  %v348_v0 = vsel %vm79_vm0, %v546_v61, %v545_v60 }
  0x18   :  { %209 = vrot.lane.b32.xlu0 %v208_v35, %s581_s27  ;;  %v553_v1 = vld [vmem:[%s1160_s0 + $0x6] ss:$8 sm:$0xf]   ;;  %v554_v2 = vld [vmem:[%s1160_s0 - $0x19] ss:$8 sm:$0xf0]   ;;  %v335_v3 = vsel %vm79_vm0, %v542_v63, %v331_v62 }
  0x19   :  { %v549_v4 = vld [vmem:[%s1160_s0 + $0x4] ss:$8 sm:$0xf]   ;;  %v550_v5 = vld [vmem:[%s1160_s0 - $0x1b] ss:$8 sm:$0xf0]   ;;  %v374_v10 = vsel %vm79_vm0, %v554_v2, %v553_v1 }
  0x1a   :  { %v2_v6 = vld [vmem:[%s1160_s0] sm:$0xff]   ;;  %v440_v7 = vld [vmem:[%s1160_s0 + $0x8] sm:$0xff]   ;;  %v449_v8 = vld [vmem:[%s1160_s0 + $0x10] sm:$0xff]   ;;  %v361_v11 = vsel %vm79_vm0, %v550_v5, %v549_v4 }
  0x1b   :  { %247 = vrot.lane.b32.xlu1 %v246_v40, %s582_s15  ;;  %4 = vst.msk [vmem:[%s1161_s1] sm:$0x1] %vm3_vm1, %v2_v6   ;;  %433 = vst.msk [vmem:[%s1161_s1 + $0x1f] sm:$0x2] %vm3_vm1, %v2_v6   ;;  %v458_v9 = vld [vmem:[%s1160_s0 + $0x18] sm:$0xff]  }
  0x1c   :  { %234 = vrot.lane.b32.xlu0 %v233_v41, %s582_s15  ;;  %434 = vst.msk [vmem:[%s1161_s1 + $0x3e] sm:$0x4] %vm3_vm1, %v2_v6   ;;  %435 = vst.msk [vmem:[%s1161_s1 + $0x5d] sm:$0x8] %vm3_vm1, %v2_v6  }
  0x1d   :  { %436 = vst.msk [vmem:[%s1161_s1 + $0x7c] sm:$0x10] %vm3_vm1, %v2_v6   ;;  %437 = vst.msk [vmem:[%s1161_s1 + $0x9b] sm:$0x20] %vm3_vm1, %v2_v6  }
  0x1e   :  { %438 = vst.msk [vmem:[%s1161_s1 + $0xba] sm:$0x40] %vm3_vm1, %v2_v6   ;;  %439 = vst.msk [vmem:[%s1161_s1 + $0xd9] sm:$0x80] %vm3_vm1, %v2_v6  }
  0x1f   :  { %273 = vrot.lane.b32.xlu1 %v272_v46, %s582_s15  ;;  %441 = vst.msk [vmem:[%s1161_s1 + $0x8] sm:$0x1] %vm3_vm1, %v440_v7   ;;  %442 = vst.msk [vmem:[%s1161_s1 + $0x27] sm:$0x2] %vm3_vm1, %v440_v7  }
  0x20   :  { %260 = vrot.lane.b32.xlu0 %v259_v47, %s582_s15  ;;  %443 = vst.msk [vmem:[%s1161_s1 + $0x46] sm:$0x4] %vm3_vm1, %v440_v7   ;;  %444 = vst.msk [vmem:[%s1161_s1 + $0x65] sm:$0x8] %vm3_vm1, %v440_v7  }
  0x21   :  { %445 = vst.msk [vmem:[%s1161_s1 + $0x84] sm:$0x10] %vm3_vm1, %v440_v7   ;;  %446 = vst.msk [vmem:[%s1161_s1 + $0xa3] sm:$0x20] %vm3_vm1, %v440_v7  }
  0x22   :  { %447 = vst.msk [vmem:[%s1161_s1 + $0xc2] sm:$0x40] %vm3_vm1, %v440_v7   ;;  %448 = vst.msk [vmem:[%s1161_s1 + $0xe1] sm:$0x80] %vm3_vm1, %v440_v7  }
  0x23   :  { %298 = vrot.lane.b32.xlu1 %v297_v52, %s583_s3  ;;  %450 = vst.msk [vmem:[%s1161_s1 + $0x10] sm:$0x1] %vm3_vm1, %v449_v8   ;;  %451 = vst.msk [vmem:[%s1161_s1 + $0x2f] sm:$0x2] %vm3_vm1, %v449_v8  }
  0x24   :  { %285 = vrot.lane.b32.xlu0 %v284_v53, %s583_s3  ;;  %452 = vst.msk [vmem:[%s1161_s1 + $0x4e] sm:$0x4] %vm3_vm1, %v449_v8   ;;  %453 = vst.msk [vmem:[%s1161_s1 + $0x6d] sm:$0x8] %vm3_vm1, %v449_v8  }
  0x25   :  { %454 = vst.msk [vmem:[%s1161_s1 + $0x8c] sm:$0x10] %vm3_vm1, %v449_v8   ;;  %455 = vst.msk [vmem:[%s1161_s1 + $0xab] sm:$0x20] %vm3_vm1, %v449_v8  }
  0x26   :  { %456 = vst.msk [vmem:[%s1161_s1 + $0xca] sm:$0x40] %vm3_vm1, %v449_v8   ;;  %457 = vst.msk [vmem:[%s1161_s1 + $0xe9] sm:$0x80] %vm3_vm1, %v449_v8  }
  0x27   :  { %324 = vrot.lane.b32.xlu1 %v323_v58, %s583_s3  ;;  %459 = vst.msk [vmem:[%s1161_s1 + $0x18] sm:$0x1] %vm3_vm1, %v458_v9   ;;  %460 = vst.msk [vmem:[%s1161_s1 + $0x37] sm:$0x2] %vm3_vm1, %v458_v9  }
  0x28   :  { %311 = vrot.lane.b32.xlu0 %v310_v59, %s583_s3  ;;  %461 = vst.msk [vmem:[%s1161_s1 + $0x56] sm:$0x4] %vm3_vm1, %v458_v9   ;;  %462 = vst.msk [vmem:[%s1161_s1 + $0x75] sm:$0x8] %vm3_vm1, %v458_v9  }
  0x29   :  { %463 = vst.msk [vmem:[%s1161_s1 + $0x94] sm:$0x10] %vm3_vm1, %v458_v9   ;;  %464 = vst.msk [vmem:[%s1161_s1 + $0xb3] sm:$0x20] %vm3_vm1, %v458_v9  }
  0x2a   :  { %465 = vst.msk [vmem:[%s1161_s1 + $0xd2] sm:$0x40] %vm3_vm1, %v458_v9   ;;  %466 = vst.msk [vmem:[%s1161_s1 + $0xf1] sm:$0x80] %vm3_vm1, %v458_v9  }
  0x2b   :  { %349 = vrot.lane.b32.xlu1 %v348_v0, %s584_s26  ;;  %v560_v12 = vld [vmem:[%s1160_s0 + $0x2] ss:$8 sm:$0xf]   ;;  %v561_v13 = vld [vmem:[%s1160_s0 - $0x1d] ss:$8 sm:$0xf0]  }
  0x2c   :  { %336 = vrot.lane.b32.xlu0 %v335_v3, %s584_s26  ;;  %v382_v14 = vld [vmem:[%s1160_s0] ss:$8 sm:$0xf]   ;;  %v557_v15 = vld [vmem:[%s1160_s0 - $0x1f] ss:$8 sm:$0xf0]   ;;  %v399_v16 = vsel %vm79_vm0, %v561_v13, %v560_v12 }
  0x2d   :  { %v386_v17 = vsel %vm79_vm0, %v557_v15, %v382_v14  ;;  %v568_v18 = vld [vmem:[%s1160_s0 + $0x6] ss:$8 sm:$0xf]   ;;  %v569_v19 = vld [vmem:[%s1160_s0 - $0x19] ss:$8 sm:$0xf0]  }
  0x2e   :  { %v564_v20 = vld [vmem:[%s1160_s0 + $0x4] ss:$8 sm:$0xf]   ;;  %v565_v21 = vld [vmem:[%s1160_s0 - $0x1b] ss:$8 sm:$0xf0]   ;;  %v425_v22 = vsel %vm79_vm0, %v569_v19, %v568_v18 }
  0x2f   :  { %375 = vrot.lane.b32.xlu1 %v374_v10, %s584_s26  ;;  %s585_s0 = smov 16   ;;  %v412_v23 = vsel %vm79_vm0, %v565_v21, %v564_v20 }
  0x30   :  { %362 = vrot.lane.b32.xlu0 %v361_v11, %s584_s26 }
  0x33   :  { %400 = vrot.lane.b32.xlu1 %v399_v16, %s585_s0 }
  0x34   :  { %387 = vrot.lane.b32.xlu0 %v386_v17, %s585_s0 }
  0x37   :  { %426 = vrot.lane.b32.xlu1 %v425_v22, %s585_s0 }
  0x38   :  { %413 = vrot.lane.b32.xlu0 %v412_v23, %s585_s0 }
  0x75   :  { %v108_v24 = vpop.permute.xlu1 %107  }
  0x76   :  { %476 = vst.msk [vmem:[%s1161_s1 + $0x81] ss:$8 sm:$0xf] %vm3_vm1, %v108_v24   ;;  %477 = vst.msk [vmem:[%s1161_s1 + $0x81] ss:$8 sm:$0xf0] %vm3_vm1, %v108_v24   ;;  %v82_v25 = vpop.permute.xlu0 %81  }
  0x77   :  { %468 = vst.msk [vmem:[%s1161_s1 + $0x1] ss:$8 sm:$0xf] %vm3_vm1, %v82_v25   ;;  %469 = vst.msk [vmem:[%s1161_s1 + $0x1] ss:$8 sm:$0xf0] %vm3_vm1, %v82_v25  }
  0x79   :  { %v121_v26 = vpop.permute.xlu1 %120  }
  0x7a   :  { %480 = vst.msk [vmem:[%s1161_s1 + $0xc1] ss:$8 sm:$0xf] %vm3_vm1, %v121_v26   ;;  %481 = vst.msk [vmem:[%s1161_s1 + $0xc1] ss:$8 sm:$0xf0] %vm3_vm1, %v121_v26   ;;  %v95_v27 = vpop.permute.xlu0 %94  }
  0x7b   :  { %472 = vst.msk [vmem:[%s1161_s1 + $0x41] ss:$8 sm:$0xf] %vm3_vm1, %v95_v27   ;;  %473 = vst.msk [vmem:[%s1161_s1 + $0x41] ss:$8 sm:$0xf0] %vm3_vm1, %v95_v27  }
  0x7d   :  { %v146_v28 = vpop.permute.xlu1 %145  }
  0x7e   :  { %487 = vst.msk [vmem:[%s1161_s1 + $0x42] ss:$8 sm:$0xf] %vm3_vm1, %v146_v28   ;;  %488 = vst.msk [vmem:[%s1161_s1 + $0x42] ss:$8 sm:$0xf0] %vm3_vm1, %v146_v28   ;;  %v133_v29 = vpop.permute.xlu0 %132  }
  0x7f   :  { %483 = vst.msk [vmem:[%s1161_s1 + $0x2] ss:$8 sm:$0xf] %vm3_vm1, %v133_v29   ;;  %484 = vst.msk [vmem:[%s1161_s1 + $0x2] ss:$8 sm:$0xf0] %vm3_vm1, %v133_v29  }
  0x81   :  { %v172_v30 = vpop.permute.xlu1 %171  }
  0x82   :  { %495 = vst.msk [vmem:[%s1161_s1 + $0xc2] ss:$8 sm:$0xf] %vm3_vm1, %v172_v30   ;;  %496 = vst.msk [vmem:[%s1161_s1 + $0xc2] ss:$8 sm:$0xf0] %vm3_vm1, %v172_v30   ;;  %v159_v31 = vpop.permute.xlu0 %158  }
  0x83   :  { %491 = vst.msk [vmem:[%s1161_s1 + $0x82] ss:$8 sm:$0xf] %vm3_vm1, %v159_v31   ;;  %492 = vst.msk [vmem:[%s1161_s1 + $0x82] ss:$8 sm:$0xf0] %vm3_vm1, %v159_v31  }
  0x85   :  { %v197_v32 = vpop.permute.xlu1 %196  }
  0x86   :  { %502 = vst.msk [vmem:[%s1161_s1 + $0x43] ss:$8 sm:$0xf] %vm3_vm1, %v197_v32   ;;  %503 = vst.msk [vmem:[%s1161_s1 + $0x43] ss:$8 sm:$0xf0] %vm3_vm1, %v197_v32   ;;  %v184_v33 = vpop.permute.xlu0 %183  }
  0x87   :  { %498 = vst.msk [vmem:[%s1161_s1 + $0x3] ss:$8 sm:$0xf] %vm3_vm1, %v184_v33   ;;  %499 = vst.msk [vmem:[%s1161_s1 + $0x3] ss:$8 sm:$0xf0] %vm3_vm1, %v184_v33  }
  0x89   :  { %v223_v34 = vpop.permute.xlu1 %222  }
  0x8a   :  { %510 = vst.msk [vmem:[%s1161_s1 + $0xc3] ss:$8 sm:$0xf] %vm3_vm1, %v223_v34   ;;  %511 = vst.msk [vmem:[%s1161_s1 + $0xc3] ss:$8 sm:$0xf0] %vm3_vm1, %v223_v34   ;;  %v210_v35 = vpop.permute.xlu0 %209  }
  0x8b   :  { %506 = vst.msk [vmem:[%s1161_s1 + $0x83] ss:$8 sm:$0xf] %vm3_vm1, %v210_v35   ;;  %507 = vst.msk [vmem:[%s1161_s1 + $0x83] ss:$8 sm:$0xf0] %vm3_vm1, %v210_v35  }
  0x8d   :  { %v248_v36 = vpop.permute.xlu1 %247  }
  0x8e   :  { %517 = vst.msk [vmem:[%s1161_s1 + $0x44] ss:$8 sm:$0xf] %vm3_vm1, %v248_v36   ;;  %518 = vst.msk [vmem:[%s1161_s1 + $0x44] ss:$8 sm:$0xf0] %vm3_vm1, %v248_v36   ;;  %v235_v37 = vpop.permute.xlu0 %234  }
  0x8f   :  { %513 = vst.msk [vmem:[%s1161_s1 + $0x4] ss:$8 sm:$0xf] %vm3_vm1, %v235_v37   ;;  %514 = vst.msk [vmem:[%s1161_s1 + $0x4] ss:$8 sm:$0xf0] %vm3_vm1, %v235_v37  }
  0x91   :  { %v274_v38 = vpop.permute.xlu1 %273  }
  0x92   :  { %525 = vst.msk [vmem:[%s1161_s1 + $0xc4] ss:$8 sm:$0xf] %vm3_vm1, %v274_v38   ;;  %526 = vst.msk [vmem:[%s1161_s1 + $0xc4] ss:$8 sm:$0xf0] %vm3_vm1, %v274_v38   ;;  %v261_v39 = vpop.permute.xlu0 %260  }
  0x93   :  { %521 = vst.msk [vmem:[%s1161_s1 + $0x84] ss:$8 sm:$0xf] %vm3_vm1, %v261_v39   ;;  %522 = vst.msk [vmem:[%s1161_s1 + $0x84] ss:$8 sm:$0xf0] %vm3_vm1, %v261_v39  }
  0x95   :  { %v299_v40 = vpop.permute.xlu1 %298  }
  0x96   :  { %532 = vst.msk [vmem:[%s1161_s1 + $0x45] ss:$8 sm:$0xf] %vm3_vm1, %v299_v40   ;;  %533 = vst.msk [vmem:[%s1161_s1 + $0x45] ss:$8 sm:$0xf0] %vm3_vm1, %v299_v40   ;;  %v286_v41 = vpop.permute.xlu0 %285  }
  0x97   :  { %528 = vst.msk [vmem:[%s1161_s1 + $0x5] ss:$8 sm:$0xf] %vm3_vm1, %v286_v41   ;;  %529 = vst.msk [vmem:[%s1161_s1 + $0x5] ss:$8 sm:$0xf0] %vm3_vm1, %v286_v41  }
  0x99   :  { %v325_v42 = vpop.permute.xlu1 %324  }
  0x9a   :  { %540 = vst.msk [vmem:[%s1161_s1 + $0xc5] ss:$8 sm:$0xf] %vm3_vm1, %v325_v42   ;;  %541 = vst.msk [vmem:[%s1161_s1 + $0xc5] ss:$8 sm:$0xf0] %vm3_vm1, %v325_v42   ;;  %v312_v43 = vpop.permute.xlu0 %311  }
  0x9b   :  { %536 = vst.msk [vmem:[%s1161_s1 + $0x85] ss:$8 sm:$0xf] %vm3_vm1, %v312_v43   ;;  %537 = vst.msk [vmem:[%s1161_s1 + $0x85] ss:$8 sm:$0xf0] %vm3_vm1, %v312_v43  }
  0x9d   :  { %v350_v44 = vpop.permute.xlu1 %349  }
  0x9e   :  { %547 = vst.msk [vmem:[%s1161_s1 + $0x46] ss:$8 sm:$0xf] %vm3_vm1, %v350_v44   ;;  %548 = vst.msk [vmem:[%s1161_s1 + $0x46] ss:$8 sm:$0xf0] %vm3_vm1, %v350_v44   ;;  %v337_v45 = vpop.permute.xlu0 %336  }
  0x9f   :  { %543 = vst.msk [vmem:[%s1161_s1 + $0x6] ss:$8 sm:$0xf] %vm3_vm1, %v337_v45   ;;  %544 = vst.msk [vmem:[%s1161_s1 + $0x6] ss:$8 sm:$0xf0] %vm3_vm1, %v337_v45  }
  0xa1   :  { %v376_v46 = vpop.permute.xlu1 %375  }
  0xa2   :  { %555 = vst.msk [vmem:[%s1161_s1 + $0xc6] ss:$8 sm:$0xf] %vm3_vm1, %v376_v46   ;;  %556 = vst.msk [vmem:[%s1161_s1 + $0xc6] ss:$8 sm:$0xf0] %vm3_vm1, %v376_v46   ;;  %v363_v47 = vpop.permute.xlu0 %362  }
  0xa3   :  { %551 = vst.msk [vmem:[%s1161_s1 + $0x86] ss:$8 sm:$0xf] %vm3_vm1, %v363_v47   ;;  %552 = vst.msk [vmem:[%s1161_s1 + $0x86] ss:$8 sm:$0xf0] %vm3_vm1, %v363_v47  }
  0xa5   :  { %v401_v48 = vpop.permute.xlu1 %400  }
  0xa6   :  { %562 = vst.msk [vmem:[%s1161_s1 + $0x47] ss:$8 sm:$0xf] %vm3_vm1, %v401_v48   ;;  %563 = vst.msk [vmem:[%s1161_s1 + $0x47] ss:$8 sm:$0xf0] %vm3_vm1, %v401_v48   ;;  %v388_v49 = vpop.permute.xlu0 %387  }
  0xa7   :  { %558 = vst.msk [vmem:[%s1161_s1 + $0x7] ss:$8 sm:$0xf] %vm3_vm1, %v388_v49   ;;  %559 = vst.msk [vmem:[%s1161_s1 + $0x7] ss:$8 sm:$0xf0] %vm3_vm1, %v388_v49  }
  0xa9   :  { %v427_v50 = vpop.permute.xlu1 %426  }
  0xaa   :  { %570 = vst.msk [vmem:[%s1161_s1 + $0xc7] ss:$8 sm:$0xf] %vm3_vm1, %v427_v50   ;;  %571 = vst.msk [vmem:[%s1161_s1 + $0xc7] ss:$8 sm:$0xf0] %vm3_vm1, %v427_v50   ;;  %v414_v51 = vpop.permute.xlu0 %413  }
  0xab   :  { %566 = vst.msk [vmem:[%s1161_s1 + $0x87] ss:$8 sm:$0xf] %vm3_vm1, %v414_v51   ;;  %567 = vst.msk [vmem:[%s1161_s1 + $0x87] ss:$8 sm:$0xf0] %vm3_vm1, %v414_v51  }

// kernel: squeeze.30
= control target key start
LH: loop header
LB: loop body
LE: loop exit
PB: predicated region body
PF: predicated region fallthrough
CT: control target
= control target key end

     0   :  { %vm225_vm0 = vcmask 1047556   ;;  %s513_s9 = smov 64   ;;  %vm82_vm1 = vcmask 261120   ;;  %s514_s10 = smov 32   ;;  %s861_s0 = inlined_call_operand.vmem [shape: f32[1,3,2048], index: 0, kind: input, shape index: {}]   ;;  %s862_s1 = inlined_call_operand.vmem [shape: f32[3,2,32,32], index: 1, kind: output, shape index: {}]  }
   0x1   :  { %v437_v0 = vld [vmem:[%s861_s0 + $0x1c] sm:$0xf]  ;;  %v438_v1 = vld [vmem:[%s861_s0 + $0x18] sm:$0xf]  ;;  %v439_v2 = vld [vmem:[%s861_s0 + $0x14] sm:$0xf] }
   0x2   :  { %49 = vst [vmem:[#allocation0 + $0x38] sm:$0xf] %v437_v0  ;;  %54 = vst [vmem:[#allocation0 + $0x30] sm:$0xf] %v438_v1  ;;  %v440_v3 = vld [vmem:[%s861_s0 + $0x10] sm:$0xf] }
   0x3   :  { %59 = vst [vmem:[#allocation0 + $0x28] sm:$0xf] %v439_v2  ;;  %v441_v4 = vld [vmem:[%s861_s0 + $0xc] sm:$0xf]  ;;  %v442_v5 = vld [vmem:[%s861_s0 + $0x8] sm:$0xf] }
   0x4   :  { %64 = vst [vmem:[#allocation0 + $0x20] sm:$0xf] %v440_v3  ;;  %69 = vst [vmem:[#allocation0 + $0x18] sm:$0xf] %v441_v4  ;;  %v443_v6 = vld [vmem:[%s861_s0 + $0x4] sm:$0xf] }
   0x5   :  { %74 = vst [vmem:[#allocation0 + $0x10] sm:$0xf] %v442_v5  ;;  %v79_v7 = vld [vmem:[%s861_s0] sm:$0xf]  ;;  %78 = vst [vmem:[#allocation0 + $0x8] sm:$0xf] %v443_v6 }
   0x6   :  { %80 = vst [vmem:[#allocation0] sm:$0xf] %v79_v7  ;;  %v429_v8 = vld [vmem:[%s861_s0 + $0x3c] sm:$0xf]  ;;  %v430_v9 = vld [vmem:[%s861_s0 + $0x38] sm:$0xf] }
   0x7   :  { %v431_v10 = vld [vmem:[%s861_s0 + $0x34] sm:$0xf]  ;;  %9 = vst [vmem:[#allocation0 + $0x78] sm:$0xf] %v429_v8  ;;  %14 = vst [vmem:[#allocation0 + $0x70] sm:$0xf] %v430_v9 }
   0x8   :  { %19 = vst [vmem:[#allocation0 + $0x68] sm:$0xf] %v431_v10  ;;  %v432_v11 = vld [vmem:[%s861_s0 + $0x30] sm:$0xf]  ;;  %v433_v12 = vld [vmem:[%s861_s0 + $0x2c] sm:$0xf] }
   0x9   :  { %v434_v13 = vld [vmem:[%s861_s0 + $0x28] sm:$0xf]  ;;  %24 = vst [vmem:[#allocation0 + $0x60] sm:$0xf] %v432_v11  ;;  %29 = vst [vmem:[#allocation0 + $0x58] sm:$0xf] %v433_v12 }
   0xa   :  { %34 = vst [vmem:[#allocation0 + $0x50] sm:$0xf] %v434_v13  ;;  %v435_v14 = vld [vmem:[%s861_s0 + $0x24] sm:$0xf]  ;;  %v436_v15 = vld [vmem:[%s861_s0 + $0x20] sm:$0xf] }
   0xb   :  { %39 = vst [vmem:[#allocation0 + $0x48] sm:$0xf] %v435_v14  ;;  %44 = vst [vmem:[#allocation0 + $0x40] sm:$0xf] %v436_v15  ;;  %s512_s0 = smov 96  }
   0xc   :  { %v246_v16 = vld [vmem:[#allocation0 + $0x2] ss:$8 sm:$0xf0]   ;;  %v224_v17 = vld [vmem:[#allocation0] ss:$8 sm:$0xf0]  }
   0xd   :  { %v244_v18 = vld [vmem:[#allocation0 + $0x2] ss:$8 sm:$0xf]   ;;  %v223_v19 = vld [vmem:[#allocation0] ss:$8 sm:$0xf]  }
   0xe   :  { %v248_v20 = vsel %vm225_vm0, %v246_v16, %v244_v18  ;;  %v226_v21 = vsel %vm225_vm0, %v224_v17, %v223_v19  ;;  %v233_v22 = vld [vmem:[#allocation0 + $0x1] ss:$8 sm:$0xf]   ;;  %v287_v34 = vld [vmem:[#allocation0] ss:$8 sm:$0xf]  }
   0xf   :  { %v235_v23 = vld [vmem:[#allocation0 + $0x1] ss:$8 sm:$0xf0]   ;;  %249 = vrot.lane.b32.xlu1 %v248_v20, %s512_s0  ;;  %227 = vrot.lane.b32.xlu0 %v226_v21, %s512_s0  ;;  %v288_v35 = vld [vmem:[#allocation0] ss:$8 sm:$0xf0]  }
  0x10   :  { %v257_v24 = vld [vmem:[#allocation0 + $0x40] ss:$8 sm:$0xf0]   ;;  %v268_v25 = vld [vmem:[#allocation0 + $0x41] ss:$8 sm:$0xf0]   ;;  %v237_v26 = vsel %vm225_vm0, %v235_v23, %v233_v22  ;;  %v290_v38 = vsel %vm225_vm0, %v288_v35, %v287_v34 }
  0x11   :  { %v279_v31 = vld [vmem:[#allocation0 + $0x42] ss:$8 sm:$0xf0]   ;;  %v297_v36 = vld [vmem:[#allocation0 + $0x1] ss:$8 sm:$0xf]  }
  0x12   :  { %v255_v27 = vld [vmem:[#allocation0 + $0x40] ss:$8 sm:$0xf]   ;;  %v266_v28 = vld [vmem:[#allocation0 + $0x41] ss:$8 sm:$0xf]  }
  0x13   :  { %v259_v29 = vsel %vm225_vm0, %v257_v24, %v255_v27  ;;  %v277_v30 = vld [vmem:[#allocation0 + $0x42] ss:$8 sm:$0xf]   ;;  %238 = vrot.lane.b32.xlu0 %v237_v26, %s512_s0  ;;  %v270_v32 = vsel %vm225_vm0, %v268_v25, %v266_v28  ;;  %v299_v37 = vld [vmem:[#allocation0 + $0x1] ss:$8 sm:$0xf0]  }
  0x14   :  { %260 = vrot.lane.b32.xlu1 %v259_v29, %s512_s0  ;;  %v281_v33 = vsel %vm225_vm0, %v279_v31, %v277_v30  ;;  %v301_v39 = vsel %vm225_vm0, %v299_v37, %v297_v36  ;;  %v308_v40 = vld [vmem:[#allocation0 + $0x2] ss:$8 sm:$0xf]   ;;  %v319_v42 = vld [vmem:[#allocation0 + $0x40] ss:$8 sm:$0xf]  }
  0x15   :  { %v310_v41 = vld [vmem:[#allocation0 + $0x2] ss:$8 sm:$0xf0]   ;;  %v321_v43 = vld [vmem:[#allocation0 + $0x40] ss:$8 sm:$0xf0]  }
  0x16   :  { %v312_v44 = vsel %vm225_vm0, %v310_v41, %v308_v40  ;;  %v323_v45 = vsel %vm225_vm0, %v321_v43, %v319_v42  ;;  %v330_v46 = vld [vmem:[#allocation0 + $0x41] ss:$8 sm:$0xf]   ;;  %v341_v48 = vld [vmem:[#allocation0 + $0x42] ss:$8 sm:$0xf]  }
  0x17   :  { %271 = vrot.lane.b32.xlu0 %v270_v32, %s512_s0  ;;  %v332_v47 = vld [vmem:[#allocation0 + $0x41] ss:$8 sm:$0xf0]   ;;  %v343_v49 = vld [vmem:[#allocation0 + $0x42] ss:$8 sm:$0xf0]  }
  0x18   :  { %282 = vrot.lane.b32.xlu1 %v281_v33, %s512_s0  ;;  %v351_v50 = vld [vmem:[#allocation0] ss:$8 sm:$0xf]   ;;  %v334_v52 = vsel %vm225_vm0, %v332_v47, %v330_v46  ;;  %v345_v53 = vsel %vm225_vm0, %v343_v49, %v341_v48  ;;  %v361_v54 = vld [vmem:[#allocation0 + $0x1] ss:$8 sm:$0xf]  }
  0x19   :  { %v352_v51 = vld [vmem:[#allocation0] ss:$8 sm:$0xf0]   ;;  %v363_v55 = vld [vmem:[#allocation0 + $0x1] ss:$8 sm:$0xf0]  }
  0x1a   :  { %v81_v56 = vld [vmem:[#allocation0] sm:$0x7]   ;;  %v89_v57 = vld [vmem:[#allocation0 + $0x8] sm:$0x7]   ;;  %v98_v58 = vld [vmem:[#allocation0 + $0x10] sm:$0x7]   ;;  %v354_v5 = vsel %vm225_vm0, %v352_v51, %v351_v50  ;;  %v365_v6 = vsel %vm225_vm0, %v363_v55, %v361_v54 }
  0x1b   :  { %291 = vrot.lane.b32.xlu0 %v290_v38, %s513_s9  ;;  %83 = vst.msk [vmem:[%s862_s1] sm:$0x1] %vm82_vm1, %v81_v56   ;;  %444 = vst.msk [vmem:[%s862_s1 + $0x3f] sm:$0x2] %vm82_vm1, %v81_v56   ;;  %v107_v59 = vld [vmem:[#allocation0 + $0x18] sm:$0x7]  }
  0x1c   :  { %302 = vrot.lane.b32.xlu1 %v301_v39, %s513_s9  ;;  %445 = vst.msk [vmem:[%s862_s1 + $0x7e] sm:$0x4] %vm82_vm1, %v81_v56   ;;  %446 = vst.msk [vmem:[%s862_s1 + $0x4] sm:$0x1] %vm82_vm1, %v89_v57   ;;  %v116_v60 = vld [vmem:[#allocation0 + $0x20] sm:$0x7]  }
  0x1d   :  { %447 = vst.msk [vmem:[%s862_s1 + $0x43] sm:$0x2] %vm82_vm1, %v89_v57   ;;  %448 = vst.msk [vmem:[%s862_s1 + $0x82] sm:$0x4] %vm82_vm1, %v89_v57   ;;  %v125_v61 = vld [vmem:[#allocation0 + $0x28] sm:$0x7]  }
  0x1e   :  { %449 = vst.msk [vmem:[%s862_s1 + $0x8] sm:$0x1] %vm82_vm1, %v98_v58   ;;  %450 = vst.msk [vmem:[%s862_s1 + $0x47] sm:$0x2] %vm82_vm1, %v98_v58   ;;  %v134_v2 = vld [vmem:[#allocation0 + $0x30] sm:$0x7]  }
  0x1f   :  { %313 = vrot.lane.b32.xlu0 %v312_v44, %s513_s9  ;;  %451 = vst.msk [vmem:[%s862_s1 + $0x86] sm:$0x4] %vm82_vm1, %v98_v58   ;;  %v372_v62 = vld [vmem:[#allocation0 + $0x2] ss:$8 sm:$0xf]  }
  0x20   :  { %324 = vrot.lane.b32.xlu1 %v323_v45, %s513_s9  ;;  %v374_v63 = vld [vmem:[#allocation0 + $0x2] ss:$8 sm:$0xf0]   ;;  %v383_v0 = vld [vmem:[#allocation0 + $0x40] ss:$8 sm:$0xf]  }
  0x21   :  { %v385_v1 = vld [vmem:[#allocation0 + $0x40] ss:$8 sm:$0xf0]   ;;  %452 = vst.msk [vmem:[%s862_s1 + $0xc] sm:$0x1] %vm82_vm1, %v107_v59   ;;  %v376_v14 = vsel %vm225_vm0, %v374_v63, %v372_v62 }
  0x22   :  { %453 = vst.msk [vmem:[%s862_s1 + $0x4b] sm:$0x2] %vm82_vm1, %v107_v59   ;;  %454 = vst.msk [vmem:[%s862_s1 + $0x8a] sm:$0x4] %vm82_vm1, %v107_v59   ;;  %v143_v3 = vld [vmem:[#allocation0 + $0x38] sm:$0x7]   ;;  %v387_v15 = vsel %vm225_vm0, %v385_v1, %v383_v0 }
  0x23   :  { %335 = vrot.lane.b32.xlu0 %v334_v52, %s513_s9  ;;  %455 = vst.msk [vmem:[%s862_s1 + $0x10] sm:$0x1] %vm82_vm1, %v116_v60   ;;  %456 = vst.msk [vmem:[%s862_s1 + $0x4f] sm:$0x2] %vm82_vm1, %v116_v60   ;;  %v152_v4 = vld [vmem:[#allocation0 + $0x40] sm:$0x7]  }
  0x24   :  { %346 = vrot.lane.b32.xlu1 %v345_v53, %s513_s9  ;;  %457 = vst.msk [vmem:[%s862_s1 + $0x8e] sm:$0x4] %vm82_vm1, %v116_v60   ;;  %458 = vst.msk [vmem:[%s862_s1 + $0x14] sm:$0x1] %vm82_vm1, %v125_v61   ;;  %v161_v7 = vld [vmem:[#allocation0 + $0x48] sm:$0x7]  }
  0x25   :  { %459 = vst.msk [vmem:[%s862_s1 + $0x53] sm:$0x2] %vm82_vm1, %v125_v61   ;;  %460 = vst.msk [vmem:[%s862_s1 + $0x92] sm:$0x4] %vm82_vm1, %v125_v61   ;;  %v170_v8 = vld [vmem:[#allocation0 + $0x50] sm:$0x7]  }
  0x26   :  { %461 = vst.msk [vmem:[%s862_s1 + $0x18] sm:$0x1] %vm82_vm1, %v134_v2   ;;  %462 = vst.msk [vmem:[%s862_s1 + $0x57] sm:$0x2] %vm82_vm1, %v134_v2   ;;  %v179_v9 = vld [vmem:[#allocation0 + $0x58] sm:$0x7]  }
  0x27   :  { %463 = vst.msk [vmem:[%s862_s1 + $0x96] sm:$0x4] %vm82_vm1, %v134_v2   ;;  %464 = vst.msk [vmem:[%s862_s1 + $0x1c] sm:$0x1] %vm82_vm1, %v143_v3   ;;  %v188_v10 = vld [vmem:[#allocation0 + $0x60] sm:$0x7]   ;;  %355 = vrot.lane.b32.xlu0 %v354_v5, %s514_s10 }
  0x28   :  { %465 = vst.msk [vmem:[%s862_s1 + $0x5b] sm:$0x2] %vm82_vm1, %v143_v3   ;;  %466 = vst.msk [vmem:[%s862_s1 + $0x9a] sm:$0x4] %vm82_vm1, %v143_v3   ;;  %v197_v11 = vld [vmem:[#allocation0 + $0x68] sm:$0x7]   ;;  %366 = vrot.lane.b32.xlu1 %v365_v6, %s514_s10 }
  0x29   :  { %467 = vst.msk [vmem:[%s862_s1 + $0x20] sm:$0x1] %vm82_vm1, %v152_v4   ;;  %468 = vst.msk [vmem:[%s862_s1 + $0x5f] sm:$0x2] %vm82_vm1, %v152_v4   ;;  %v206_v12 = vld [vmem:[#allocation0 + $0x70] sm:$0x7]  }
  0x2a   :  { %469 = vst.msk [vmem:[%s862_s1 + $0x9e] sm:$0x4] %vm82_vm1, %v152_v4   ;;  %470 = vst.msk [vmem:[%s862_s1 + $0x24] sm:$0x1] %vm82_vm1, %v161_v7   ;;  %v215_v13 = vld [vmem:[#allocation0 + $0x78] sm:$0x7]  }
  0x2b   :  { %471 = vst.msk [vmem:[%s862_s1 + $0x63] sm:$0x2] %vm82_vm1, %v161_v7   ;;  %472 = vst.msk [vmem:[%s862_s1 + $0xa2] sm:$0x4] %vm82_vm1, %v161_v7   ;;  %377 = vrot.lane.b32.xlu0 %v376_v14, %s514_s10 }
  0x2c   :  { %473 = vst.msk [vmem:[%s862_s1 + $0x28] sm:$0x1] %vm82_vm1, %v170_v8   ;;  %474 = vst.msk [vmem:[%s862_s1 + $0x67] sm:$0x2] %vm82_vm1, %v170_v8   ;;  %388 = vrot.lane.b32.xlu1 %v387_v15, %s514_s10 }
  0x2d   :  { %475 = vst.msk [vmem:[%s862_s1 + $0xa6] sm:$0x4] %vm82_vm1, %v170_v8   ;;  %476 = vst.msk [vmem:[%s862_s1 + $0x2c] sm:$0x1] %vm82_vm1, %v179_v9  }
  0x2e   :  { %477 = vst.msk [vmem:[%s862_s1 + $0x6b] sm:$0x2] %vm82_vm1, %v179_v9   ;;  %478 = vst.msk [vmem:[%s862_s1 + $0xaa] sm:$0x4] %vm82_vm1, %v179_v9  }
  0x2f   :  { %479 = vst.msk [vmem:[%s862_s1 + $0x30] sm:$0x1] %vm82_vm1, %v188_v10   ;;  %480 = vst.msk [vmem:[%s862_s1 + $0x6f] sm:$0x2] %vm82_vm1, %v188_v10  }
  0x30   :  { %481 = vst.msk [vmem:[%s862_s1 + $0xae] sm:$0x4] %vm82_vm1, %v188_v10   ;;  %482 = vst.msk [vmem:[%s862_s1 + $0x34] sm:$0x1] %vm82_vm1, %v197_v11  }
  0x31   :  { %483 = vst.msk [vmem:[%s862_s1 + $0x73] sm:$0x2] %vm82_vm1, %v197_v11   ;;  %484 = vst.msk [vmem:[%s862_s1 + $0xb2] sm:$0x4] %vm82_vm1, %v197_v11  }
  0x32   :  { %485 = vst.msk [vmem:[%s862_s1 + $0x38] sm:$0x1] %vm82_vm1, %v206_v12   ;;  %486 = vst.msk [vmem:[%s862_s1 + $0x77] sm:$0x2] %vm82_vm1, %v206_v12  }
  0x33   :  { %487 = vst.msk [vmem:[%s862_s1 + $0xb6] sm:$0x4] %vm82_vm1, %v206_v12   ;;  %488 = vst.msk [vmem:[%s862_s1 + $0x3c] sm:$0x1] %vm82_vm1, %v215_v13  }
  0x34   :  { %489 = vst.msk [vmem:[%s862_s1 + $0x7b] sm:$0x2] %vm82_vm1, %v215_v13   ;;  %490 = vst.msk [vmem:[%s862_s1 + $0xba] sm:$0x4] %vm82_vm1, %v215_v13  }
  0x35   :  { %v394_v16 = vld [vmem:[#allocation0 + $0x41] ss:$8 sm:$0xf]   ;;  %v405_v18 = vld [vmem:[#allocation0 + $0x42] ss:$8 sm:$0xf]  }
  0x36   :  { %v396_v17 = vld [vmem:[#allocation0 + $0x41] ss:$8 sm:$0xf0]   ;;  %v407_v19 = vld [vmem:[#allocation0 + $0x42] ss:$8 sm:$0xf0]  }
  0x37   :  { %v398_v20 = vsel %vm225_vm0, %v396_v17, %v394_v16  ;;  %v409_v21 = vsel %vm225_vm0, %v407_v19, %v405_v18 }
  0x38   :  { %399 = vrot.lane.b32.xlu0 %v398_v20, %s514_s10  ;;  %410 = vrot.lane.b32.xlu1 %v409_v21, %s514_s10 }
  0x81   :  { %v250_v22 = vpop.permute.xlu1 %249   ;;  %v228_v23 = vpop.permute.xlu0 %227  }
  0x82   :  { %493 = vst.msk [vmem:[%s862_s1 + $0x81] ss:$4 sm:$0xff] %vm82_vm1, %v250_v22   ;;  %491 = vst.msk [vmem:[%s862_s1 + $0x1] ss:$4 sm:$0xff] %vm82_vm1, %v228_v23  }
  0x85   :  { %v239_v24 = vpop.permute.xlu0 %238  }
  0x86   :  { %v261_v25 = vpop.permute.xlu1 %260   ;;  %492 = vst.msk [vmem:[%s862_s1 + $0x41] ss:$4 sm:$0xff] %vm82_vm1, %v239_v24  }
  0x87   :  { %494 = vst.msk [vmem:[%s862_s1 + $0x21] ss:$4 sm:$0xff] %vm82_vm1, %v261_v25  }
  0x89   :  { %v272_v26 = vpop.permute.xlu0 %271  }
  0x8a   :  { %v283_v27 = vpop.permute.xlu1 %282   ;;  %495 = vst.msk [vmem:[%s862_s1 + $0x61] ss:$4 sm:$0xff] %vm82_vm1, %v272_v26  }
  0x8b   :  { %496 = vst.msk [vmem:[%s862_s1 + $0xa1] ss:$4 sm:$0xff] %vm82_vm1, %v283_v27  }
  0x8d   :  { %v292_v28 = vpop.permute.xlu0 %291  }
  0x8e   :  { %v303_v29 = vpop.permute.xlu1 %302   ;;  %497 = vst.msk [vmem:[%s862_s1 + $0x2] ss:$4 sm:$0xff] %vm82_vm1, %v292_v28  }
  0x8f   :  { %498 = vst.msk [vmem:[%s862_s1 + $0x42] ss:$4 sm:$0xff] %vm82_vm1, %v303_v29  }
  0x91   :  { %v314_v30 = vpop.permute.xlu0 %313  }
  0x92   :  { %v325_v31 = vpop.permute.xlu1 %324   ;;  %499 = vst.msk [vmem:[%s862_s1 + $0x82] ss:$4 sm:$0xff] %vm82_vm1, %v314_v30  }
  0x93   :  { %500 = vst.msk [vmem:[%s862_s1 + $0x22] ss:$4 sm:$0xff] %vm82_vm1, %v325_v31  }
  0x95   :  { %v336_v32 = vpop.permute.xlu0 %335  }
  0x96   :  { %v347_v33 = vpop.permute.xlu1 %346   ;;  %501 = vst.msk [vmem:[%s862_s1 + $0x62] ss:$4 sm:$0xff] %vm82_vm1, %v336_v32  }
  0x97   :  { %502 = vst.msk [vmem:[%s862_s1 + $0xa2] ss:$4 sm:$0xff] %vm82_vm1, %v347_v33  }
  0x99   :  { %v356_v34 = vpop.permute.xlu0 %355  }
  0x9a   :  { %v367_v35 = vpop.permute.xlu1 %366   ;;  %503 = vst.msk [vmem:[%s862_s1 + $0x3] ss:$4 sm:$0xff] %vm82_vm1, %v356_v34  }
  0x9b   :  { %504 = vst.msk [vmem:[%s862_s1 + $0x43] ss:$4 sm:$0xff] %vm82_vm1, %v367_v35  }
  0x9d   :  { %v378_v36 = vpop.permute.xlu0 %377  }
  0x9e   :  { %v389_v37 = vpop.permute.xlu1 %388   ;;  %505 = vst.msk [vmem:[%s862_s1 + $0x83] ss:$4 sm:$0xff] %vm82_vm1, %v378_v36  }
  0x9f   :  { %506 = vst.msk [vmem:[%s862_s1 + $0x23] ss:$4 sm:$0xff] %vm82_vm1, %v389_v37  }
  0xaa   :  { %v400_v38 = vpop.permute.xlu0 %399   ;;  %v411_v39 = vpop.permute.xlu1 %410  }
  0xab   :  { %507 = vst.msk [vmem:[%s862_s1 + $0x63] ss:$4 sm:$0xff] %vm82_vm1, %v400_v38   ;;  %508 = vst.msk [vmem:[%s862_s1 + $0xa3] ss:$4 sm:$0xff] %vm82_vm1, %v411_v39  }

// kernel: generator_forward.9
= control target key start
LH: loop header
LB: loop body
LE: loop exit
PB: predicated region body
PF: predicated region fallthrough
CT: control target
= control target key end

     0   :  { %s1152_s12 = smov 0   ;;  %s1154_s13 = smov 0   ;;  %s1316_s0 = inlined_call_operand.vmem [shape: f32[4,32,2048], index: 0, kind: input, shape index: {}]   ;;  %s1317_s1 = inlined_call_operand.vmem [shape: f32[4,3,32], index: 1, kind: input, shape index: {}]   ;;  %s1318_s2 = inlined_call_operand.vmem [shape: f32[3,1], index: 2, kind: input, shape index: {}]   ;;  %s1319_s3 = inlined_call_operand.vmem [shape: f32[4,3,2048], index: 3, kind: output, shape index: {}]  }
   0x1   :  { %s1156_s14 = smov 0  }
   0x2 LB: > { %s25_s15 = sadd.s32 1, %s1124_s13  ;;  %p1029_p0 = scmp.ge.s32.totalorder %s1128_s14, 1  ;;  %s1128_s14 = sphi %s1156_s14, %s13_s14   ;;  %s1124_s13 = sphi %s1154_s13, %s1321_s13   ;;  %s1120_s12 = sphi %s1152_s12, %s1320_s12  }
   0x3   : > { %p27_p1 = scmp.ge.s32.totalorder %s25_s15, 4  ;;  %p167_p2 = scmp.lt.s32.totalorder %s1128_s14, 5 }
   0x5   : > { %s1323_s15 = smov (%p27_p1, %s25_s15), 0  ;;  %p168_p3 = pnand %p1029_p0, %p167_p2 }
   0x6   : > { %p204_p4 = scmp.lt.s32.totalorder (!%p168_p3), %s1120_s12, 3 }
   0x7   : > { %171 = sbr.rel (%p168_p3) target bundleno = 269 (0x10d), region = 32 }
   0xc   : > { %v292_v0 = vld [vmem:[%s1318_s2] sm:$0x7]  ;;  %v1130_v1 = vmov 0.0   ;;  %s1325_s12 = smov (!%p204_p4, %s1120_s12), 3  ;;  %v1131_v2 = vmov 0   ;;  %vm298_vm0 = vcmask 261120  }
   0xd   : > { %366 = vmatprep.mubr.f32.mxu0 %v1130_v1  ;;  %437 = vmatprep.mubr.f32.mxu1 %v1130_v1  ;;  %s1045_s18 = sshll.u32 %s1325_s12, 9  ;;  %s1032_s22 = sshll.u32 %s1325_s12, 2 }
   0xe   : > { %1073 = vset.pattern.permute.xlu0 %v1131_v2  ;;  %s1181_s21 = scalar_lea.vmem %s1316_s0, %s1045_s18  ;;  %s216_s25 = scalar_lea.vmem %s1317_s1, %s1032_s22 }
   0xf   : > { %295 = vperm.xlu0 %1073, %v292_v0   ;;  %v277_v3 = vld [vmem:[%s1181_s21 + $0x188] sm:$0xff]  ;;  %v279_v4 = vld [vmem:[%s1181_s21 + $0x198] sm:$0xff]  ;;  %v276_v5 = vld [vmem:[%s1181_s21 + $0x180] sm:$0xff]  ;;  %s1046_s26 = sshll.u32 %s1325_s12, 6 }
  0x10   : > { %326 = vmatprep.subr.mxu0 %v277_v3  ;;  %397 = vmatprep.subr.mxu1 %v279_v4  ;;  %v278_v6 = vld [vmem:[%s1181_s21 + $0x190] sm:$0xff]  ;;  %v261_v7 = vld [vmem:[%s1181_s21 + $0x108] sm:$0xff]  ;;  %v263_v8 = vld [vmem:[%s1181_s21 + $0x118] sm:$0xff]  ;;  %s1289_s29 = scalar_lea.vmem %s1319_s3, %s1046_s26 }
  0x11   : > { %327 = vmatpush1.msra.mxu0 %v276_v5  ;;  %398 = vmatpush1.msra.mxu1 %v278_v6  ;;  %v260_v9 = vld [vmem:[%s1181_s21 + $0x100] sm:$0xff]  ;;  %v262_v10 = vld [vmem:[%s1181_s21 + $0x110] sm:$0xff]  ;;  %v245_v11 = vld [vmem:[%s1181_s21 + $0x88] sm:$0xff] }
  0x12   : > { %328 = vmatprep.subr.mxu0 %v261_v7  ;;  %399 = vmatprep.subr.mxu1 %v263_v8  ;;  %v247_v12 = vld [vmem:[%s1181_s21 + $0x98] sm:$0xff]  ;;  %v244_v13 = vld [vmem:[%s1181_s21 + $0x80] sm:$0xff]  ;;  %v246_v14 = vld [vmem:[%s1181_s21 + $0x90] sm:$0xff] }
  0x13   : > { %329 = vmatpush1.msra.mxu0 %v260_v9  ;;  %400 = vmatpush1.msra.mxu1 %v262_v10  ;;  %v229_v15 = vld [vmem:[%s1181_s21 + $0x8] sm:$0xff]  ;;  %v231_v16 = vld [vmem:[%s1181_s21 + $0x18] sm:$0xff]  ;;  %v228_v17 = vld [vmem:[%s1181_s21] sm:$0xff] }
  0x14   : > { %330 = vmatprep.subr.mxu0 %v245_v11  ;;  %401 = vmatprep.subr.mxu1 %v247_v12  ;;  %v230_v18 = vld [vmem:[%s1181_s21 + $0x10] sm:$0xff]  ;;  %v1203_v19 = vld [vmem:[%s216_s25] sm:$0x7]  ;;  %v281_v20 = vld [vmem:[%s1181_s21 + $0x1a8] sm:$0xff] }
  0x15   : > { %331 = vmatpush1.msra.mxu0 %v244_v13  ;;  %402 = vmatpush1.msra.mxu1 %v246_v14  ;;  %v283_v21 = vld [vmem:[%s1181_s21 + $0x1b8] sm:$0xff]  ;;  %v280_v22 = vld [vmem:[%s1181_s21 + $0x1a0] sm:$0xff]  ;;  %v282_v23 = vld [vmem:[%s1181_s21 + $0x1b0] sm:$0xff] }
  0x16   : > { %332 = vmatprep.subr.mxu0 %v229_v15  ;;  %403 = vmatprep.subr.mxu1 %v231_v16  ;;  %v265_v24 = vld [vmem:[%s1181_s21 + $0x128] sm:$0xff]  ;;  %v267_v25 = vld [vmem:[%s1181_s21 + $0x138] sm:$0xff]  ;;  %v264_v26 = vld [vmem:[%s1181_s21 + $0x120] sm:$0xff] }
  0x17   : > { %333 = vmatpush1.msra.mxu0 %v228_v17  ;;  %404 = vmatpush1.msra.mxu1 %v230_v18  ;;  %v266_v27 = vld [vmem:[%s1181_s21 + $0x130] sm:$0xff]  ;;  %v249_v28 = vld [vmem:[%s1181_s21 + $0xa8] sm:$0xff]  ;;  %v251_v29 = vld [vmem:[%s1181_s21 + $0xb8] sm:$0xff] }
  0x18   : > { %1035 = vmatmul.mubr.msk.f32.vlgmr.msra.gmra.mxu0 %vm298_vm0, %v1203_v19  ;;  %1036 = vmatmul.mubr.msk.f32.vlgmr.msra.gmra.mxu1 %vm298_vm0, %v1203_v19  ;;  %v248_v30 = vld [vmem:[%s1181_s21 + $0xa0] sm:$0xff]  ;;  %v250_v31 = vld [vmem:[%s1181_s21 + $0xb0] sm:$0xff]  ;;  %v233_v32 = vld [vmem:[%s1181_s21 + $0x28] sm:$0xff] }
  0x19   : > { %468 = vmatprep.subr.mxu0 %v281_v20  ;;  %539 = vmatprep.subr.mxu1 %v283_v21  ;;  %v235_v33 = vld [vmem:[%s1181_s21 + $0x38] sm:$0xff]  ;;  %v232_v34 = vld [vmem:[%s1181_s21 + $0x20] sm:$0xff]  ;;  %v234_v35 = vld [vmem:[%s1181_s21 + $0x30] sm:$0xff] }
  0x1a   : > { %469 = vmatpush1.msra.mxu0 %v280_v22  ;;  %540 = vmatpush1.msra.mxu1 %v282_v23  ;;  %v285_v36 = vld [vmem:[%s1181_s21 + $0x1c8] sm:$0xff]  ;;  %v287_v37 = vld [vmem:[%s1181_s21 + $0x1d8] sm:$0xff]  ;;  %v284_v38 = vld [vmem:[%s1181_s21 + $0x1c0] sm:$0xff] }
  0x1b   : > { %470 = vmatprep.subr.mxu0 %v265_v24  ;;  %541 = vmatprep.subr.mxu1 %v267_v25  ;;  %v286_v39 = vld [vmem:[%s1181_s21 + $0x1d0] sm:$0xff]  ;;  %v269_v40 = vld [vmem:[%s1181_s21 + $0x148] sm:$0xff]  ;;  %v271_v41 = vld [vmem:[%s1181_s21 + $0x158] sm:$0xff] }
  0x1c   : > { %471 = vmatpush1.msra.mxu0 %v264_v26  ;;  %542 = vmatpush1.msra.mxu1 %v266_v27  ;;  %v268_v42 = vld [vmem:[%s1181_s21 + $0x140] sm:$0xff]  ;;  %v270_v43 = vld [vmem:[%s1181_s21 + $0x150] sm:$0xff]  ;;  %v253_v44 = vld [vmem:[%s1181_s21 + $0xc8] sm:$0xff] }
  0x1d   : > { %472 = vmatprep.subr.mxu0 %v249_v28  ;;  %543 = vmatprep.subr.mxu1 %v251_v29  ;;  %v255_v45 = vld [vmem:[%s1181_s21 + $0xd8] sm:$0xff]  ;;  %v252_v46 = vld [vmem:[%s1181_s21 + $0xc0] sm:$0xff]  ;;  %v254_v47 = vld [vmem:[%s1181_s21 + $0xd0] sm:$0xff] }
  0x1e   : > { %473 = vmatpush1.msra.mxu0 %v248_v30  ;;  %544 = vmatpush1.msra.mxu1 %v250_v31  ;;  %v237_v48 = vld [vmem:[%s1181_s21 + $0x48] sm:$0xff]  ;;  %v239_v49 = vld [vmem:[%s1181_s21 + $0x58] sm:$0xff]  ;;  %v236_v50 = vld [vmem:[%s1181_s21 + $0x40] sm:$0xff] }
  0x1f   : > { %474 = vmatprep.subr.mxu0 %v233_v32  ;;  %545 = vmatprep.subr.mxu1 %v235_v33  ;;  %v238_v51 = vld [vmem:[%s1181_s21 + $0x50] sm:$0xff]  ;;  %v289_v52 = vld [vmem:[%s1181_s21 + $0x1e8] sm:$0xff]  ;;  %v291_v53 = vld [vmem:[%s1181_s21 + $0x1f8] sm:$0xff] }
  0x20   : > { %475 = vmatpush1.msra.mxu0 %v232_v34  ;;  %508 = vmatprep.mubr.f32.mxu0 %v1130_v1  ;;  %v288_v54 = vld [vmem:[%s1181_s21 + $0x1e0] sm:$0xff]  ;;  %v290_v55 = vld [vmem:[%s1181_s21 + $0x1f0] sm:$0xff]  ;;  %v273_v56 = vld [vmem:[%s1181_s21 + $0x168] sm:$0xff] }
  0x21   : > { %546 = vmatpush1.msra.mxu1 %v234_v35  ;;  %579 = vmatprep.mubr.f32.mxu1 %v1130_v1  ;;  %v275_v57 = vld [vmem:[%s1181_s21 + $0x178] sm:$0xff]  ;;  %v272_v58 = vld [vmem:[%s1181_s21 + $0x160] sm:$0xff]  ;;  %v274_v59 = vld [vmem:[%s1181_s21 + $0x170] sm:$0xff] }
  0x22   : > { %1037 = vmatmul.mubr.msk.f32.vlgmr.msra.gmra.mxu0 %vm298_vm0, %v1203_v19  ;;  %1038 = vmatmul.mubr.msk.f32.vlgmr.msra.gmra.mxu1 %vm298_vm0, %v1203_v19  ;;  %v257_v60 = vld [vmem:[%s1181_s21 + $0xe8] sm:$0xff]  ;;  %v259_v61 = vld [vmem:[%s1181_s21 + $0xf8] sm:$0xff]  ;;  %v256_v62 = vld [vmem:[%s1181_s21 + $0xe0] sm:$0xff] }
  0x23   : > { %610 = vmatprep.subr.mxu0 %v285_v36  ;;  %681 = vmatprep.subr.mxu1 %v287_v37  ;;  %v258_v63 = vld [vmem:[%s1181_s21 + $0xf0] sm:$0xff]  ;;  %v241_v0 = vld [vmem:[%s1181_s21 + $0x68] sm:$0xff]  ;;  %v243_v2 = vld [vmem:[%s1181_s21 + $0x78] sm:$0xff] }
  0x24   : > { %611 = vmatpush1.msra.mxu0 %v284_v38  ;;  %682 = vmatpush1.msra.mxu1 %v286_v39  ;;  %v240_v3 = vld [vmem:[%s1181_s21 + $0x60] sm:$0xff]  ;;  %v242_v4 = vld [vmem:[%s1181_s21 + $0x70] sm:$0xff] }
  0x25   : > { %612 = vmatprep.subr.mxu0 %v269_v40  ;;  %683 = vmatprep.subr.mxu1 %v271_v41 }
  0x26   : > { %613 = vmatpush1.msra.mxu0 %v268_v42  ;;  %684 = vmatpush1.msra.mxu1 %v270_v43 }
  0x27   : > { %614 = vmatprep.subr.mxu0 %v253_v44  ;;  %685 = vmatprep.subr.mxu1 %v255_v45 }
  0x28   : > { %615 = vmatpush1.msra.mxu0 %v252_v46  ;;  %686 = vmatpush1.msra.mxu1 %v254_v47 }
  0x29   : > { %616 = vmatprep.subr.mxu0 %v237_v48  ;;  %687 = vmatprep.subr.mxu1 %v239_v49 }
  0x2a   : > { %617 = vmatpush1.msra.mxu0 %v236_v50  ;;  %650 = vmatprep.mubr.f32.mxu0 %v1130_v1 }
  0x2b   : > { %688 = vmatpush1.msra.mxu1 %v238_v51  ;;  %721 = vmatprep.mubr.f32.mxu1 %v1130_v1 }
  0x2c   : > { %1039 = vmatmul.mubr.msk.f32.vlgmr.msra.gmra.mxu0 %vm298_vm0, %v1203_v19  ;;  %1040 = vmatmul.mubr.msk.f32.vlgmr.msra.gmra.mxu1 %vm298_vm0, %v1203_v19 }
  0x2d   : > { %752 = vmatprep.subr.mxu0 %v289_v52  ;;  %823 = vmatprep.subr.mxu1 %v291_v53 }
  0x2e   : > { %753 = vmatpush1.msra.mxu0 %v288_v54  ;;  %824 = vmatpush1.msra.mxu1 %v290_v55 }
  0x2f   : > { %754 = vmatprep.subr.mxu0 %v273_v56  ;;  %825 = vmatprep.subr.mxu1 %v275_v57 }
  0x30   : > { %755 = vmatpush1.msra.mxu0 %v272_v58  ;;  %826 = vmatpush1.msra.mxu1 %v274_v59 }
  0x31   : > { %756 = vmatprep.subr.mxu0 %v257_v60  ;;  %827 = vmatprep.subr.mxu1 %v259_v61 }
  0x32   : > { %757 = vmatpush1.msra.mxu0 %v256_v62  ;;  %828 = vmatpush1.msra.mxu1 %v258_v63 }
  0x33   : > { %758 = vmatprep.subr.mxu0 %v241_v0  ;;  %829 = vmatprep.subr.mxu1 %v243_v2 }
  0x34   : > { %759 = vmatpush1.msra.mxu0 %v240_v3  ;;  %792 = vmatprep.mubr.f32.mxu0 %v1130_v1 }
  0x35   : > { %830 = vmatpush1.msra.mxu1 %v242_v4  ;;  %863 = vmatprep.mubr.f32.mxu1 %v1130_v1 }
  0x36   : > { %1041 = vmatmul.mubr.msk.f32.vlgmr.msra.gmra.mxu0 %vm298_vm0, %v1203_v19  ;;  %1042 = vmatmul.mubr.msk.f32.vlgmr.msra.gmra.mxu1 %vm298_vm0, %v1203_v19 }
  0x8a   : > { %v1275_v5 = vpop.permute.xlu0 %295 }
  0xd8   : > { %v368_v6 = vpop.f32.mrf.mxu0  ;;  %v439_v7 = vpop.f32.mrf.mxu1 }
  0xd9   : > { %v369_v8 = vadd.f32 %v368_v6, %v1275_v5  ;;  %v440_v9 = vadd.f32 %v439_v7, %v1275_v5 }
  0xda   : > { %v370_v10 = vpop.f32.mrf.mxu0  ;;  %v441_v11 = vpop.f32.mrf.mxu1 }
  0xdb   : > { %v371_v12 = vadd.f32 %v370_v10, %v1275_v5  ;;  %1074 = vtanh.f32 %v369_v8  ;;  %v442_v1 = vadd.f32 %v441_v11, %v1275_v5 }
  0xdc   : > { %1076 = vtanh.f32 %v440_v9 }
  0xdd   : > { %1078 = vtanh.f32 %v371_v12 }
  0xde   : > { %1080 = vtanh.f32 %v442_v1 }
  0xe2   : > { %v510_v13 = vpop.f32.mrf.mxu0  ;;  %v581_v14 = vpop.f32.mrf.mxu1 }
  0xe3   : > { %v511_v15 = vadd.f32 %v510_v13, %v1275_v5  ;;  %v582_v16 = vadd.f32 %v581_v14, %v1275_v5 }
  0xe4   : > { %v512_v17 = vpop.f32.mrf.mxu0  ;;  %v583_v18 = vpop.f32.mrf.mxu1 }
  0xe5   : > { %1082 = vtanh.f32 %v511_v15  ;;  %v513_v19 = vadd.f32 %v512_v17, %v1275_v5  ;;  %v584_v20 = vadd.f32 %v583_v18, %v1275_v5 }
  0xe6   : > { %1084 = vtanh.f32 %v582_v16 }
  0xe7   : > { %1086 = vtanh.f32 %v513_v19 }
  0xe8   : > { %v1075_v21 = vpop.eup %1074  ;;  %1088 = vtanh.f32 %v584_v20 }
  0xe9   : > { %v1077_v22 = vpop.eup %1076 }
  0xea   : > { %v1079_v23 = vpop.eup %1078 }
  0xeb   : > { %v1081_v24 = vpop.eup %1080  ;;  %v902_v25 = vcombine.low %v1075_v21, %v1079_v23 }
  0xec   : > { %v903_v26 = vcombine.low %v1077_v22, %v1081_v24  ;;  %v652_v27 = vpop.f32.mrf.mxu0  ;;  %v723_v28 = vpop.f32.mrf.mxu1 }
  0xed   : > { %918 = vst [vmem:[%s1289_s29] sm:$0x77] %v902_v25  ;;  %v653_v29 = vadd.f32 %v652_v27, %v1275_v5  ;;  %v724_v30 = vadd.f32 %v723_v28, %v1275_v5 }
  0xee   : > { %919 = vst [vmem:[%s1289_s29 + $0x8] sm:$0x77] %v903_v26  ;;  %v654_v31 = vpop.f32.mrf.mxu0  ;;  %v725_v32 = vpop.f32.mrf.mxu1 }
  0xef   : > { %1090 = vtanh.f32 %v653_v29  ;;  %v655_v33 = vadd.f32 %v654_v31, %v1275_v5  ;;  %v726_v34 = vadd.f32 %v725_v32, %v1275_v5 }
  0xf0   : > { %1092 = vtanh.f32 %v724_v30 }
  0xf1   : > { %1094 = vtanh.f32 %v655_v33 }
  0xf2   : > { %v1083_v35 = vpop.eup %1082  ;;  %1096 = vtanh.f32 %v726_v34 }
  0xf3   : > { %v1085_v36 = vpop.eup %1084 }
  0xf4   : > { %v1087_v37 = vpop.eup %1086 }
  0xf5   : > { %v1089_v38 = vpop.eup %1088  ;;  %v904_v39 = vcombine.low %v1083_v35, %v1087_v37 }
  0xf6   : > { %v905_v40 = vcombine.low %v1085_v36, %v1089_v38  ;;  %v794_v41 = vpop.f32.mrf.mxu0  ;;  %v865_v42 = vpop.f32.mrf.mxu1 }
  0xf7   : > { %920 = vst [vmem:[%s1289_s29 + $0x10] sm:$0x77] %v904_v39  ;;  %v795_v43 = vadd.f32 %v794_v41, %v1275_v5  ;;  %v866_v44 = vadd.f32 %v865_v42, %v1275_v5 }
  0xf8   : > { %921 = vst [vmem:[%s1289_s29 + $0x18] sm:$0x77] %v905_v40  ;;  %v796_v45 = vpop.f32.mrf.mxu0  ;;  %v867_v46 = vpop.f32.mrf.mxu1 }
  0xf9   : > { %1098 = vtanh.f32 %v795_v43  ;;  %v797_v47 = vadd.f32 %v796_v45, %v1275_v5  ;;  %v868_v48 = vadd.f32 %v867_v46, %v1275_v5 }
  0xfa   : > { %1100 = vtanh.f32 %v866_v44 }
  0xfb   : > { %1102 = vtanh.f32 %v797_v47 }
  0xfc   : > { %v1091_v49 = vpop.eup %1090  ;;  %1104 = vtanh.f32 %v868_v48 }
  0xfd   : > { %v1093_v50 = vpop.eup %1092 }
  0xfe   : > { %v1095_v51 = vpop.eup %1094 }
  0xff   : > { %v1097_v52 = vpop.eup %1096  ;;  %v906_v53 = vcombine.low %v1091_v49, %v1095_v51 }
 0x100   : > { %v907_v54 = vcombine.low %v1093_v50, %v1097_v52 }
 0x101   : > { %922 = vst [vmem:[%s1289_s29 + $0x20] sm:$0x77] %v906_v53 }
 0x102   : > { %923 = vst [vmem:[%s1289_s29 + $0x28] sm:$0x77] %v907_v54 }
 0x106   : > { %v1099_v55 = vpop.eup %1098 }
 0x107   : > { %v1101_v56 = vpop.eup %1100 }
 0x108   : > { %v1103_v57 = vpop.eup %1102 }
 0x109   : > { %v1105_v58 = vpop.eup %1104  ;;  %v908_v59 = vcombine.low %v1099_v55, %v1103_v57 }
 0x10a   : > { %v909_v60 = vcombine.low %v1101_v56, %v1105_v58 }
 0x10b   : > { %924 = vst [vmem:[%s1289_s29 + $0x30] sm:$0x77] %v908_v59 }
 0x10c   : > { %925 = vst [vmem:[%s1289_s29 + $0x38] sm:$0x77] %v909_v60 }
 0x10d PF: > { %s13_s14 = sadd.s32 1, %s1128_s14   ;;  %s1320_s12 = smov %s1124_s13 }
 0x10e   : > { %p10_p5 = scmp.ge.s32.totalorder %s13_s14, 6   ;;  %s1321_s13 = smov %s1323_s15 }
 0x110   :  { %12 = sbr.rel (!%p10_p5) target bundleno = 2 (0x2), region = 65 }

</bundles_post_ra>
